<compile_context>
chip_gen: v7x
topology: tpu7x:2x2x1
jax: 0.10.0
libtpu: 0.0.40
codegen_flags: <defaults>
</compile_context>

<pallas_src>
import functools

import jax
import jax.numpy as jnp
from jax import lax
from jax.experimental import pallas as pl
from jax.experimental.pallas import tpu as pltpu


def _round_up(x, m):
    return (x + m - 1) // m * m


def _make_gru_kernel(T, T_chunk, num_chunks, B_blk, D, H_pad, mm_dtype,
                     mm_precision):
    """Builds the kernel body with all static sizes / dtypes closed over."""
    Hp = H_pad
    f32 = jnp.float32
    tail_steps = T - (num_chunks - 1) * T_chunk      # steps in last chunk

    def kernel(x_ref, wih_ref, whh_ref, bih_ref, bhh_ref, fcw_ref, fcb_ref,
               out_ref, gi_ref, h_ref):
        chunk = pl.program_id(1)                     # serial time-chunk axis

        @pl.when(chunk == 0)
        def _init():
            h_ref[...] = jnp.zeros_like(h_ref)

        # ---- hoisted input projection for the whole chunk: one MXU matmul.
        # (Pipelining it one chunk ahead only pays off for D >= ~128; skipped.)
        x2d = x_ref[...].reshape(T_chunk * B_blk, D).astype(mm_dtype)
        gi = jnp.dot(x2d, wih_ref[...], preferred_element_type=f32,
                     precision=mm_precision) + bih_ref[...]
        gi_ref[...] = gi.reshape(T_chunk, B_blk, 3 * Hp)

        whh = whh_ref[...]
        # hoist the recurrent-bias broadcast out of the serial loop
        bhh = jnp.broadcast_to(bhh_ref[...], (B_blk, 3 * Hp))

        def step(t, h):
            # (Optional further win: keep whh weight-stationary in the MXU via
            # pltpu.matmul_push_rhs/acc_lhs/pop if the bundle dump shows the
            # weight push re-issued every unrolled step.)
            gh = jnp.dot(h.astype(mm_dtype), whh, preferred_element_type=f32,
                         precision=mm_precision) + bhh
            gi_t = gi_ref[t]                          # (B_blk, 3*Hp) lane-aligned slabs
            r = jax.nn.sigmoid(gi_t[:, 0 * Hp:1 * Hp] + gh[:, 0 * Hp:1 * Hp])
            z = jax.nn.sigmoid(gi_t[:, 1 * Hp:2 * Hp] + gh[:, 1 * Hp:2 * Hp])
            n = jnp.tanh(gi_t[:, 2 * Hp:3 * Hp] + r * gh[:, 2 * Hp:3 * Hp])
            return n + z * (h - n)                    # == (1 - z) * n + z * h

        def run_steps(n_steps):
            unroll = True if n_steps <= 32 else 8
            h_ref[...] = lax.fori_loop(0, n_steps, step, h_ref[...],
                                       unroll=unroll)

        if tail_steps == T_chunk:                     # T % T_chunk == 0
            run_steps(T_chunk)
        else:                                         # exact tail: no masked steps
            @pl.when(chunk < num_chunks - 1)
            def _full():
                run_steps(T_chunk)

            @pl.when(chunk == num_chunks - 1)
            def _tail():
                run_steps(tail_steps)

        @pl.when(chunk == num_chunks - 1)
        def _finalize():
            out_ref[...] = (jnp.dot(h_ref[...], fcw_ref[...],
                                    preferred_element_type=f32)
                            + fcb_ref[...])

    return kernel


def _vmem_footprint_bytes(t_chunk, b_blk, d, h_pad, mm_bytes):
    """Conservative VMEM footprint incl. Pallas 2x-buffering of all inputs."""
    f32b = 4
    gates = 3 * h_pad
    d_lanes = _round_up(d, 128)
    x_bytes = 2 * t_chunk * b_blk * d_lanes * f32b            # streamed x (2x buf)
    gi_bytes = t_chunk * b_blk * gates * f32b                 # gi scratch
    w_bytes = 2 * (_round_up(d, 8) + h_pad) * gates * mm_bytes  # w_ih + w_hh (2x buf)
    bias_bytes = 2 * 2 * 8 * gates * f32b                     # b_ih / b_hh (2x buf)
    fc_bytes = 2 * (h_pad + 8) * 128 * f32b                   # fc_w / fc_b (2x buf)
    h_bytes = b_blk * h_pad * f32b                            # carried h scratch
    out_bytes = 2 * b_blk * 128 * f32b                        # out block
    return (x_bytes + gi_bytes + w_bytes + bias_bytes + fc_bytes + h_bytes
            + out_bytes)


def gru_model_forward(x_btd, w_ih, w_hh, b_ih, b_hh, fc_w, fc_b, *,
                      t_chunk=128, matmul_dtype=jnp.bfloat16,
                      mm_precision=None):
    """x_btd: (B, T, D) batch-first (PyTorch convention). Returns (B, 1).

    matmul_dtype: operand dtype fed to the MXU (bf16 default; accumulation and
      all elementwise math stays f32).  Use jnp.float32 (optionally with
      mm_precision=lax.Precision.HIGHEST) for tight-tolerance validation.
    Padding: padded hidden lanes stay exactly 0; padded batch rows evolve to
      nonzero values and are sliced off by out[:B].
    """
    B, T, D = x_btd.shape
    H = w_hh.shape[1]
    f32 = jnp.float32
    mm_dtype = jnp.dtype(matmul_dtype)
    mm_bytes = mm_dtype.itemsize

    # ---- batch blocking: >= 2 "parallel" blocks when B > 8 so v7x can use
    # both TensorCores (neutral on single-TC v5e/v6e).
    if B > 8:
        B_pad = _round_up(B, 16)
        num_b_blocks = 2
    else:
        B_pad = 8
        num_b_blocks = 1
    B_blk = B_pad // num_b_blocks

    H_pad = _round_up(H, 128)            # lane tile -> [r|z|n] slabs lane-aligned

    # ---- generation-aware VMEM budget and T_chunk ----
    try:
        vmem_cap = int(pltpu.get_tpu_info().vmem_capacity_bytes)
    except Exception:                    # fall back to the tightest (v7x) budget
        vmem_cap = 64 << 20
    budget = min(vmem_cap * 3 // 4, 100 << 20)   # ~48 MiB v7x / ~96 MiB v5e,v6e

    T_chunk = max(1, min(t_chunk, T))
    while (T_chunk > 8 and
           _vmem_footprint_bytes(T_chunk, B_blk, D, H_pad, mm_bytes) > budget):
        T_chunk = max(8, (T_chunk + 1) // 2)
    num_chunks = -(-T // T_chunk)
    T_pad = num_chunks * T_chunk
    footprint = _vmem_footprint_bytes(T_chunk, B_blk, D, H_pad, mm_bytes)
    vmem_limit = int(min(max(footprint + (2 << 20), 4 << 20),
                         vmem_cap * 95 // 100))

    # ---- operands: time-major x, lane-aligned [r|z|n] gate slabs ----
    x_tbd = jnp.transpose(x_btd.astype(f32), (1, 0, 2))
    x_tbd = jnp.pad(x_tbd, ((0, T_pad - T), (0, B_pad - B), (0, 0)))

    def pack_gate_cols(w, dtype):        # (3H, K) -> (K, 3*H_pad)
        K = w.shape[1]
        out = jnp.zeros((K, 3 * H_pad), dtype)
        for g in range(3):
            out = out.at[:, g * H_pad:g * H_pad + H].set(
                w[g * H:(g + 1) * H, :].T.astype(dtype))
        return out

    def pack_gate_bias(b):               # (3H,) -> (1, 3*H_pad), kept f32
        out = jnp.zeros((1, 3 * H_pad), f32)
        for g in range(3):
            out = out.at[0, g * H_pad:g * H_pad + H].set(
                b[g * H:(g + 1) * H].astype(f32))
        return out

    wih_p = pack_gate_cols(w_ih, mm_dtype)                           # (D, 3Hp)
    whh_p = jnp.zeros((H_pad, 3 * H_pad), mm_dtype).at[:H, :].set(
        pack_gate_cols(w_hh, mm_dtype))                              # (Hp, 3Hp)
    bih_p = pack_gate_bias(b_ih)                                     # (1, 3Hp)
    bhh_p = pack_gate_bias(b_hh)                                     # (1, 3Hp)
    fcw_p = jnp.zeros((H_pad, 1), f32).at[:H, :].set(fc_w.T.astype(f32))
    fcb_p = fc_b.reshape(1, 1).astype(f32)

    kernel = _make_gru_kernel(T, T_chunk, num_chunks, B_blk, D, H_pad,
                              mm_dtype, mm_precision)

    out = pl.pallas_call(
        kernel,
        out_shape=jax.ShapeDtypeStruct((B_pad, 1), f32),
        grid=(num_b_blocks, num_chunks),
        in_specs=[
            # streamed x chunk: blocks over (time-chunk, batch-block)
            pl.BlockSpec((T_chunk, B_blk, D), lambda b, c: (c, b, 0)),
            # resident weights / biases (constant block index; Pallas still
            # 2x-buffers them -- folded into the VMEM footprint above)
            pl.BlockSpec((D, 3 * H_pad), lambda b, c: (0, 0)),
            pl.BlockSpec((H_pad, 3 * H_pad), lambda b, c: (0, 0)),
            pl.BlockSpec((1, 3 * H_pad), lambda b, c: (0, 0)),
            pl.BlockSpec((1, 3 * H_pad), lambda b, c: (0, 0)),
            pl.BlockSpec((H_pad, 1), lambda b, c: (0, 0)),
            pl.BlockSpec((1, 1), lambda b, c: (0, 0)),
        ],
        out_specs=pl.BlockSpec((B_blk, 1), lambda b, c: (b, 0)),
        scratch_shapes=[
            pltpu.VMEM((T_chunk, B_blk, 3 * H_pad), f32),   # gi per chunk
            pltpu.VMEM((B_blk, H_pad), f32),                # carried h
        ],
        compiler_params=pltpu.CompilerParams(
            dimension_semantics=("parallel", "arbitrary"),  # batch || , time serial
            vmem_limit_bytes=vmem_limit),
    )(x_tbd, wih_p, whh_p, bih_p, bhh_p, fcw_p, fcb_p)

    return out[:B]


def gru_model_reference(x_btd, w_ih, w_hh, b_ih, b_hh, fc_w, fc_b):
    """Pure-JAX reference matching torch.nn.GRU + Linear semantics."""
    B, T, D = x_btd.shape
    H = w_hh.shape[1]

    def step(h, x_t):
        gi = x_t @ w_ih.T + b_ih
        gh = h @ w_hh.T + b_hh
        r = jax.nn.sigmoid(gi[:, :H] + gh[:, :H])
        z = jax.nn.sigmoid(gi[:, H:2 * H] + gh[:, H:2 * H])
        n = jnp.tanh(gi[:, 2 * H:] + r * gh[:, 2 * H:])
        h_new = (1.0 - z) * n + z * h
        return h_new, None

    h0 = jnp.zeros((B, H), jnp.float32)
    h_last, _ = lax.scan(step, h0, jnp.transpose(x_btd, (1, 0, 2)))
    return h_last @ fc_w.T + fc_b


if __name__ == "__main__":
    B, T, D, H = 4, 8, 16, 32

    key = jax.random.PRNGKey(0)
    keys = jax.random.split(key, 8)
    bound = 1.0 / (H ** 0.5)

    x = jax.random.normal(keys[0], (B, T, D), dtype=jnp.float32)
    w_ih = jax.random.uniform(keys[1], (3 * H, D), jnp.float32, -bound, bound)
    w_hh = jax.random.uniform(keys[2], (3 * H, H), jnp.float32, -bound, bound)
    b_ih = jax.random.uniform(keys[3], (3 * H,), jnp.float32, -bound, bound)
    b_hh = jax.random.uniform(keys[4], (3 * H,), jnp.float32, -bound, bound)
    fc_w = jax.random.uniform(keys[5], (1, H), jnp.float32, -bound, bound)
    fc_b = jax.random.uniform(keys[6], (1,), jnp.float32, -bound, bound)

    ref = gru_model_reference(x, w_ih, w_hh, b_ih, b_hh, fc_w, fc_b)

    # f32-operand validation path: tight tolerance vs. the f32 reference.
    fwd_f32 = jax.jit(functools.partial(gru_model_forward,
                                        matmul_dtype=jnp.float32))
    out_f32 = jax.block_until_ready(
        fwd_f32(x, w_ih, w_hh, b_ih, b_hh, fc_w, fc_b))
    assert out_f32.shape == (B, 1), out_f32.shape
    assert jnp.allclose(out_f32, ref, atol=1e-5, rtol=1e-5), (out_f32, ref)

    # bf16-MXU perf path (default): f32 accumulation, bf16-level tolerance.
    fwd = jax.jit(gru_model_forward)
    out = jax.block_until_ready(fwd(x, w_ih, w_hh, b_ih, b_hh, fc_w, fc_b))
    assert out.shape == (B, 1), out.shape
    assert jnp.allclose(out, ref, atol=3e-2, rtol=3e-2), (out, ref)

    print("KERNEL_OK")
</pallas_src>

<mosaic_0001>
module attributes {stable_mosaic.version = 11 : i64} {
  func.func @kernel(%arg0: i32, %arg1: i32, %arg2: memref<8x8x16xf32, #tpu.memory_space<vmem>>, %arg3: memref<16x384xf32, #tpu.memory_space<vmem>>, %arg4: memref<128x384xf32, #tpu.memory_space<vmem>>, %arg5: memref<1x384xf32, #tpu.memory_space<vmem>>, %arg6: memref<1x384xf32, #tpu.memory_space<vmem>>, %arg7: memref<128x1xf32, #tpu.memory_space<vmem>>, %arg8: memref<1x1xf32, #tpu.memory_space<vmem>>, %arg9: memref<8x1xf32, #tpu.memory_space<vmem>>, %arg10: memref<8x8x384xf32, #tpu.memory_space<vmem>>, %arg11: memref<8x128xf32, #tpu.memory_space<vmem>>) attributes {dimension_semantics = [#tpu.dimension_semantics<parallel>, #tpu.dimension_semantics<arbitrary>], iteration_bounds = array<i64: 1, 1>, scalar_prefetch = 0 : i64, scratch_operands = 2 : i64, tpu.core_type = #tpu.core_type<tc>, window_params = [{transform_indices = @transform_0, window_bounds = array<i64: 8, 8, 16>}, {pipeline_mode = #tpu.pipeline_mode<synchronous>, transform_indices = @transform_1, window_bounds = array<i64: 16, 384>}, {pipeline_mode = #tpu.pipeline_mode<synchronous>, transform_indices = @transform_2, window_bounds = array<i64: 128, 384>}, {pipeline_mode = #tpu.pipeline_mode<synchronous>, transform_indices = @transform_3, window_bounds = array<i64: 1, 384>}, {pipeline_mode = #tpu.pipeline_mode<synchronous>, transform_indices = @transform_4, window_bounds = array<i64: 1, 384>}, {pipeline_mode = #tpu.pipeline_mode<synchronous>, transform_indices = @transform_5, window_bounds = array<i64: 128, 1>}, {pipeline_mode = #tpu.pipeline_mode<synchronous>, transform_indices = @transform_6, window_bounds = array<i64: 1, 1>}, {transform_indices = @transform_7, window_bounds = array<i64: 8, 1>}]} {
    %c0_i32 = arith.constant 0 : i32
    %0 = arith.cmpi eq, %arg1, %c0_i32 : i32
    %1 = arith.extui %0 : i1 to i32
    %c0_i32_0 = arith.constant 0 : i32
    %2 = arith.cmpi ne, %1, %c0_i32_0 : i32
    scf.if %2 {
      %cst_61 = arith.constant 0.000000e+00 : f32
      %253 = vector.broadcast %cst_61 : f32 to vector<8x128xf32>
      %c0_62 = arith.constant 0 : index
      %c0_63 = arith.constant 0 : index
      %254 = vector.load %arg11[%c0_62, %c0_63] : memref<8x128xf32, #tpu.memory_space<vmem>>, vector<8x128xf32>
      tpu.vector_store %arg11[%c0_62, %c0_63], %253 {strides = array<i32>} : memref<8x128xf32, #tpu.memory_space<vmem>>, vector<8x128xf32>,
    } else {
    }
    %c0 = arith.constant 0 : index
    %c0_1 = arith.constant 0 : index
    %c0_2 = arith.constant 0 : index
    %3 = vector.load %arg2[%c0, %c0_1, %c0_2] : memref<8x8x16xf32, #tpu.memory_space<vmem>>, vector<8x8x16xf32>
    %4 = vector.shape_cast %3 : vector<8x8x16xf32> to vector<64x16xf32>
    %c0_3 = arith.constant 0 : index
    %c0_4 = arith.constant 0 : index
    %5 = vector.load %arg3[%c0_3, %c0_4] : memref<16x384xf32, #tpu.memory_space<vmem>>, vector<16x384xf32>
    %cst = arith.constant dense<0.000000e+00> : vector<64x384xf32>
    %6 = tpu.matmul %4, %5, %cst {dimension_numbers = #tpu.dot_dimension_numbers<[1], [0], [0], [1], [0, 0, 1, 1], [], []>} : vector<64x16xf32>, vector<16x384xf32>, vector<64x384xf32> -> vector<64x384xf32>
    %c0_5 = arith.constant 0 : index
    %c0_6 = arith.constant 0 : index
    %7 = vector.load %arg5[%c0_5, %c0_6] : memref<1x384xf32, #tpu.memory_space<vmem>>, vector<1x384xf32>
    %8 = vector.broadcast %7 : vector<1x384xf32> to vector<64x384xf32>
    %9 = arith.addf %6, %8 : vector<64x384xf32>
    %10 = vector.shape_cast %9 : vector<64x384xf32> to vector<8x8x384xf32>
    %c0_7 = arith.constant 0 : index
    %c0_8 = arith.constant 0 : index
    %c0_9 = arith.constant 0 : index
    %11 = vector.load %arg10[%c0_7, %c0_8, %c0_9] : memref<8x8x384xf32, #tpu.memory_space<vmem>>, vector<8x8x384xf32>
    tpu.vector_store %arg10[%c0_7, %c0_8, %c0_9], %10 {strides = array<i32>} : memref<8x8x384xf32, #tpu.memory_space<vmem>>, vector<8x8x384xf32>,
    %c0_10 = arith.constant 0 : index
    %c0_11 = arith.constant 0 : index
    %12 = vector.load %arg4[%c0_10, %c0_11] : memref<128x384xf32, #tpu.memory_space<vmem>>, vector<128x384xf32>
    %c0_12 = arith.constant 0 : index
    %c0_13 = arith.constant 0 : index
    %13 = vector.load %arg6[%c0_12, %c0_13] : memref<1x384xf32, #tpu.memory_space<vmem>>, vector<1x384xf32>
    %14 = vector.shape_cast %13 : vector<1x384xf32> to vector<1x384xf32>
    %15 = vector.broadcast %14 : vector<1x384xf32> to vector<8x384xf32>
    %c0_14 = arith.constant 0 : index
    %c0_15 = arith.constant 0 : index
    %16 = vector.load %arg11[%c0_14, %c0_15] : memref<8x128xf32, #tpu.memory_space<vmem>>, vector<8x128xf32>
    %c0_i32_16 = arith.constant 0 : i32
    %cst_17 = arith.constant dense<0.000000e+00> : vector<8x384xf32>
    %17 = tpu.matmul %16, %12, %cst_17 {dimension_numbers = #tpu.dot_dimension_numbers<[1], [0], [0], [1], [0, 0, 1, 1], [], []>} : vector<8x128xf32>, vector<128x384xf32>, vector<8x384xf32> -> vector<8x384xf32>
    %18 = arith.addf %17, %15 : vector<8x384xf32>
    %19 = arith.index_cast %c0_i32_16 : i32 to index
    %c0_18 = arith.constant 0 : index
    %c0_19 = arith.constant 0 : index
    %20 = vector.load %arg10[%19, %c0_18, %c0_19] : memref<8x8x384xf32, #tpu.memory_space<vmem>>, vector<1x8x384xf32>
    %21 = vector.shape_cast %20 : vector<1x8x384xf32> to vector<8x384xf32>
    %22 = vector.extract_strided_slice %21 {offsets = [0, 0], sizes = [8, 128], strides = [1, 1]} : vector<8x384xf32> to vector<8x128xf32>
    %23 = vector.extract_strided_slice %18 {offsets = [0, 0], sizes = [8, 128], strides = [1, 1]} : vector<8x384xf32> to vector<8x128xf32>
    %24 = arith.addf %22, %23 : vector<8x128xf32>
    %25 = arith.negf %24 : vector<8x128xf32>
    %26 = math.exp %25 : vector<8x128xf32>
    %cst_20 = arith.constant 1.000000e+00 : f32
    %27 = vector.broadcast %cst_20 : f32 to vector<8x128xf32>
    %28 = arith.addf %27, %26 : vector<8x128xf32>
    %29 = arith.divf %27, %28 : vector<8x128xf32>
    %30 = vector.extract_strided_slice %21 {offsets = [0, 128], sizes = [8, 128], strides = [1, 1]} : vector<8x384xf32> to vector<8x128xf32>
    %31 = vector.extract_strided_slice %18 {offsets = [0, 128], sizes = [8, 128], strides = [1, 1]} : vector<8x384xf32> to vector<8x128xf32>
    %32 = arith.addf %30, %31 : vector<8x128xf32>
    %33 = arith.negf %32 : vector<8x128xf32>
    %34 = math.exp %33 : vector<8x128xf32>
    %cst_21 = arith.constant 1.000000e+00 : f32
    %35 = vector.broadcast %cst_21 : f32 to vector<8x128xf32>
    %36 = arith.addf %35, %34 : vector<8x128xf32>
    %37 = arith.divf %35, %36 : vector<8x128xf32>
    %38 = vector.extract_strided_slice %21 {offsets = [0, 256], sizes = [8, 128], strides = [1, 1]} : vector<8x384xf32> to vector<8x128xf32>
    %39 = vector.extract_strided_slice %18 {offsets = [0, 256], sizes = [8, 128], strides = [1, 1]} : vector<8x384xf32> to vector<8x128xf32>
    %40 = arith.mulf %29, %39 : vector<8x128xf32>
    %41 = arith.addf %38, %40 : vector<8x128xf32>
    %42 = math.tanh %41 : vector<8x128xf32>
    %43 = arith.subf %16, %42 : vector<8x128xf32>
    %44 = arith.mulf %37, %43 : vector<8x128xf32>
    %45 = arith.addf %42, %44 : vector<8x128xf32>
    %c1_i32 = arith.constant 1 : i32
    %cst_22 = arith.constant dense<0.000000e+00> : vector<8x384xf32>
    %46 = tpu.matmul %45, %12, %cst_22 {dimension_numbers = #tpu.dot_dimension_numbers<[1], [0], [0], [1], [0, 0, 1, 1], [], []>} : vector<8x128xf32>, vector<128x384xf32>, vector<8x384xf32> -> vector<8x384xf32>
    %47 = arith.addf %46, %15 : vector<8x384xf32>
    %48 = arith.index_cast %c1_i32 : i32 to index
    %c0_23 = arith.constant 0 : index
    %c0_24 = arith.constant 0 : index
    %49 = vector.load %arg10[%48, %c0_23, %c0_24] : memref<8x8x384xf32, #tpu.memory_space<vmem>>, vector<1x8x384xf32>
    %50 = vector.shape_cast %49 : vector<1x8x384xf32> to vector<8x384xf32>
    %51 = vector.extract_strided_slice %50 {offsets = [0, 0], sizes = [8, 128], strides = [1, 1]} : vector<8x384xf32> to vector<8x128xf32>
    %52 = vector.extract_strided_slice %47 {offsets = [0, 0], sizes = [8, 128], strides = [1, 1]} : vector<8x384xf32> to vector<8x128xf32>
    %53 = arith.addf %51, %52 : vector<8x128xf32>
    %54 = arith.negf %53 : vector<8x128xf32>
    %55 = math.exp %54 : vector<8x128xf32>
    %cst_25 = arith.constant 1.000000e+00 : f32
    %56 = vector.broadcast %cst_25 : f32 to vector<8x128xf32>
    %57 = arith.addf %56, %55 : vector<8x128xf32>
    %58 = arith.divf %56, %57 : vector<8x128xf32>
    %59 = vector.extract_strided_slice %50 {offsets = [0, 128], sizes = [8, 128], strides = [1, 1]} : vector<8x384xf32> to vector<8x128xf32>
    %60 = vector.extract_strided_slice %47 {offsets = [0, 128], sizes = [8, 128], strides = [1, 1]} : vector<8x384xf32> to vector<8x128xf32>
    %61 = arith.addf %59, %60 : vector<8x128xf32>
    %62 = arith.negf %61 : vector<8x128xf32>
    %63 = math.exp %62 : vector<8x128xf32>
    %cst_26 = arith.constant 1.000000e+00 : f32
    %64 = vector.broadcast %cst_26 : f32 to vector<8x128xf32>
    %65 = arith.addf %64, %63 : vector<8x128xf32>
    %66 = arith.divf %64, %65 : vector<8x128xf32>
    %67 = vector.extract_strided_slice %50 {offsets = [0, 256], sizes = [8, 128], strides = [1, 1]} : vector<8x384xf32> to vector<8x128xf32>
    %68 = vector.extract_strided_slice %47 {offsets = [0, 256], sizes = [8, 128], strides = [1, 1]} : vector<8x384xf32> to vector<8x128xf32>
    %69 = arith.mulf %58, %68 : vector<8x128xf32>
    %70 = arith.addf %67, %69 : vector<8x128xf32>
    %71 = math.tanh %70 : vector<8x128xf32>
    %72 = arith.subf %45, %71 : vector<8x128xf32>
    %73 = arith.mulf %66, %72 : vector<8x128xf32>
    %74 = arith.addf %71, %73 : vector<8x128xf32>
    %c2_i32 = arith.constant 2 : i32
    %cst_27 = arith.constant dense<0.000000e+00> : vector<8x384xf32>
    %75 = tpu.matmul %74, %12, %cst_27 {dimension_numbers = #tpu.dot_dimension_numbers<[1], [0], [0], [1], [0, 0, 1, 1], [], []>} : vector<8x128xf32>, vector<128x384xf32>, vector<8x384xf32> -> vector<8x384xf32>
    %76 = arith.addf %75, %15 : vector<8x384xf32>
    %77 = arith.index_cast %c2_i32 : i32 to index
    %c0_28 = arith.constant 0 : index
    %c0_29 = arith.constant 0 : index
    %78 = vector.load %arg10[%77, %c0_28, %c0_29] : memref<8x8x384xf32, #tpu.memory_space<vmem>>, vector<1x8x384xf32>
    %79 = vector.shape_cast %78 : vector<1x8x384xf32> to vector<8x384xf32>
    %80 = vector.extract_strided_slice %79 {offsets = [0, 0], sizes = [8, 128], strides = [1, 1]} : vector<8x384xf32> to vector<8x128xf32>
    %81 = vector.extract_strided_slice %76 {offsets = [0, 0], sizes = [8, 128], strides = [1, 1]} : vector<8x384xf32> to vector<8x128xf32>
    %82 = arith.addf %80, %81 : vector<8x128xf32>
    %83 = arith.negf %82 : vector<8x128xf32>
    %84 = math.exp %83 : vector<8x128xf32>
    %cst_30 = arith.constant 1.000000e+00 : f32
    %85 = vector.broadcast %cst_30 : f32 to vector<8x128xf32>
    %86 = arith.addf %85, %84 : vector<8x128xf32>
    %87 = arith.divf %85, %86 : vector<8x128xf32>
    %88 = vector.extract_strided_slice %79 {offsets = [0, 128], sizes = [8, 128], strides = [1, 1]} : vector<8x384xf32> to vector<8x128xf32>
    %89 = vector.extract_strided_slice %76 {offsets = [0, 128], sizes = [8, 128], strides = [1, 1]} : vector<8x384xf32> to vector<8x128xf32>
    %90 = arith.addf %88, %89 : vector<8x128xf32>
    %91 = arith.negf %90 : vector<8x128xf32>
    %92 = math.exp %91 : vector<8x128xf32>
    %cst_31 = arith.constant 1.000000e+00 : f32
    %93 = vector.broadcast %cst_31 : f32 to vector<8x128xf32>
    %94 = arith.addf %93, %92 : vector<8x128xf32>
    %95 = arith.divf %93, %94 : vector<8x128xf32>
    %96 = vector.extract_strided_slice %79 {offsets = [0, 256], sizes = [8, 128], strides = [1, 1]} : vector<8x384xf32> to vector<8x128xf32>
    %97 = vector.extract_strided_slice %76 {offsets = [0, 256], sizes = [8, 128], strides = [1, 1]} : vector<8x384xf32> to vector<8x128xf32>
    %98 = arith.mulf %87, %97 : vector<8x128xf32>
    %99 = arith.addf %96, %98 : vector<8x128xf32>
    %100 = math.tanh %99 : vector<8x128xf32>
    %101 = arith.subf %74, %100 : vector<8x128xf32>
    %102 = arith.mulf %95, %101 : vector<8x128xf32>
    %103 = arith.addf %100, %102 : vector<8x128xf32>
    %c3_i32 = arith.constant 3 : i32
    %cst_32 = arith.constant dense<0.000000e+00> : vector<8x384xf32>
    %104 = tpu.matmul %103, %12, %cst_32 {dimension_numbers = #tpu.dot_dimension_numbers<[1], [0], [0], [1], [0, 0, 1, 1], [], []>} : vector<8x128xf32>, vector<128x384xf32>, vector<8x384xf32> -> vector<8x384xf32>
    %105 = arith.addf %104, %15 : vector<8x384xf32>
    %106 = arith.index_cast %c3_i32 : i32 to index
    %c0_33 = arith.constant 0 : index
    %c0_34 = arith.constant 0 : index
    %107 = vector.load %arg10[%106, %c0_33, %c0_34] : memref<8x8x384xf32, #tpu.memory_space<vmem>>, vector<1x8x384xf32>
    %108 = vector.shape_cast %107 : vector<1x8x384xf32> to vector<8x384xf32>
    %109 = vector.extract_strided_slice %108 {offsets = [0, 0], sizes = [8, 128], strides = [1, 1]} : vector<8x384xf32> to vector<8x128xf32>
    %110 = vector.extract_strided_slice %105 {offsets = [0, 0], sizes = [8, 128], strides = [1, 1]} : vector<8x384xf32> to vector<8x128xf32>
    %111 = arith.addf %109, %110 : vector<8x128xf32>
    %112 = arith.negf %111 : vector<8x128xf32>
    %113 = math.exp %112 : vector<8x128xf32>
    %cst_35 = arith.constant 1.000000e+00 : f32
    %114 = vector.broadcast %cst_35 : f32 to vector<8x128xf32>
    %115 = arith.addf %114, %113 : vector<8x128xf32>
    %116 = arith.divf %114, %115 : vector<8x128xf32>
    %117 = vector.extract_strided_slice %108 {offsets = [0, 128], sizes = [8, 128], strides = [1, 1]} : vector<8x384xf32> to vector<8x128xf32>
    %118 = vector.extract_strided_slice %105 {offsets = [0, 128], sizes = [8, 128], strides = [1, 1]} : vector<8x384xf32> to vector<8x128xf32>
    %119 = arith.addf %117, %118 : vector<8x128xf32>
    %120 = arith.negf %119 : vector<8x128xf32>
    %121 = math.exp %120 : vector<8x128xf32>
    %cst_36 = arith.constant 1.000000e+00 : f32
    %122 = vector.broadcast %cst_36 : f32 to vector<8x128xf32>
    %123 = arith.addf %122, %121 : vector<8x128xf32>
    %124 = arith.divf %122, %123 : vector<8x128xf32>
    %125 = vector.extract_strided_slice %108 {offsets = [0, 256], sizes = [8, 128], strides = [1, 1]} : vector<8x384xf32> to vector<8x128xf32>
    %126 = vector.extract_strided_slice %105 {offsets = [0, 256], sizes = [8, 128], strides = [1, 1]} : vector<8x384xf32> to vector<8x128xf32>
    %127 = arith.mulf %116, %126 : vector<8x128xf32>
    %128 = arith.addf %125, %127 : vector<8x128xf32>
    %129 = math.tanh %128 : vector<8x128xf32>
    %130 = arith.subf %103, %129 : vector<8x128xf32>
    %131 = arith.mulf %124, %130 : vector<8x128xf32>
    %132 = arith.addf %129, %131 : vector<8x128xf32>
    %c4_i32 = arith.constant 4 : i32
    %cst_37 = arith.constant dense<0.000000e+00> : vector<8x384xf32>
    %133 = tpu.matmul %132, %12, %cst_37 {dimension_numbers = #tpu.dot_dimension_numbers<[1], [0], [0], [1], [0, 0, 1, 1], [], []>} : vector<8x128xf32>, vector<128x384xf32>, vector<8x384xf32> -> vector<8x384xf32>
    %134 = arith.addf %133, %15 : vector<8x384xf32>
    %135 = arith.index_cast %c4_i32 : i32 to index
    %c0_38 = arith.constant 0 : index
    %c0_39 = arith.constant 0 : index
    %136 = vector.load %arg10[%135, %c0_38, %c0_39] : memref<8x8x384xf32, #tpu.memory_space<vmem>>, vector<1x8x384xf32>
    %137 = vector.shape_cast %136 : vector<1x8x384xf32> to vector<8x384xf32>
    %138 = vector.extract_strided_slice %137 {offsets = [0, 0], sizes = [8, 128], strides = [1, 1]} : vector<8x384xf32> to vector<8x128xf32>
    %139 = vector.extract_strided_slice %134 {offsets = [0, 0], sizes = [8, 128], strides = [1, 1]} : vector<8x384xf32> to vector<8x128xf32>
    %140 = arith.addf %138, %139 : vector<8x128xf32>
    %141 = arith.negf %140 : vector<8x128xf32>
    %142 = math.exp %141 : vector<8x128xf32>
    %cst_40 = arith.constant 1.000000e+00 : f32
    %143 = vector.broadcast %cst_40 : f32 to vector<8x128xf32>
    %144 = arith.addf %143, %142 : vector<8x128xf32>
    %145 = arith.divf %143, %144 : vector<8x128xf32>
    %146 = vector.extract_strided_slice %137 {offsets = [0, 128], sizes = [8, 128], strides = [1, 1]} : vector<8x384xf32> to vector<8x128xf32>
    %147 = vector.extract_strided_slice %134 {offsets = [0, 128], sizes = [8, 128], strides = [1, 1]} : vector<8x384xf32> to vector<8x128xf32>
    %148 = arith.addf %146, %147 : vector<8x128xf32>
    %149 = arith.negf %148 : vector<8x128xf32>
    %150 = math.exp %149 : vector<8x128xf32>
    %cst_41 = arith.constant 1.000000e+00 : f32
    %151 = vector.broadcast %cst_41 : f32 to vector<8x128xf32>
    %152 = arith.addf %151, %150 : vector<8x128xf32>
    %153 = arith.divf %151, %152 : vector<8x128xf32>
    %154 = vector.extract_strided_slice %137 {offsets = [0, 256], sizes = [8, 128], strides = [1, 1]} : vector<8x384xf32> to vector<8x128xf32>
    %155 = vector.extract_strided_slice %134 {offsets = [0, 256], sizes = [8, 128], strides = [1, 1]} : vector<8x384xf32> to vector<8x128xf32>
    %156 = arith.mulf %145, %155 : vector<8x128xf32>
    %157 = arith.addf %154, %156 : vector<8x128xf32>
    %158 = math.tanh %157 : vector<8x128xf32>
    %159 = arith.subf %132, %158 : vector<8x128xf32>
    %160 = arith.mulf %153, %159 : vector<8x128xf32>
    %161 = arith.addf %158, %160 : vector<8x128xf32>
    %c5_i32 = arith.constant 5 : i32
    %cst_42 = arith.constant dense<0.000000e+00> : vector<8x384xf32>
    %162 = tpu.matmul %161, %12, %cst_42 {dimension_numbers = #tpu.dot_dimension_numbers<[1], [0], [0], [1], [0, 0, 1, 1], [], []>} : vector<8x128xf32>, vector<128x384xf32>, vector<8x384xf32> -> vector<8x384xf32>
    %163 = arith.addf %162, %15 : vector<8x384xf32>
    %164 = arith.index_cast %c5_i32 : i32 to index
    %c0_43 = arith.constant 0 : index
    %c0_44 = arith.constant 0 : index
    %165 = vector.load %arg10[%164, %c0_43, %c0_44] : memref<8x8x384xf32, #tpu.memory_space<vmem>>, vector<1x8x384xf32>
    %166 = vector.shape_cast %165 : vector<1x8x384xf32> to vector<8x384xf32>
    %167 = vector.extract_strided_slice %166 {offsets = [0, 0], sizes = [8, 128], strides = [1, 1]} : vector<8x384xf32> to vector<8x128xf32>
    %168 = vector.extract_strided_slice %163 {offsets = [0, 0], sizes = [8, 128], strides = [1, 1]} : vector<8x384xf32> to vector<8x128xf32>
    %169 = arith.addf %167, %168 : vector<8x128xf32>
    %170 = arith.negf %169 : vector<8x128xf32>
    %171 = math.exp %170 : vector<8x128xf32>
    %cst_45 = arith.constant 1.000000e+00 : f32
    %172 = vector.broadcast %cst_45 : f32 to vector<8x128xf32>
    %173 = arith.addf %172, %171 : vector<8x128xf32>
    %174 = arith.divf %172, %173 : vector<8x128xf32>
    %175 = vector.extract_strided_slice %166 {offsets = [0, 128], sizes = [8, 128], strides = [1, 1]} : vector<8x384xf32> to vector<8x128xf32>
    %176 = vector.extract_strided_slice %163 {offsets = [0, 128], sizes = [8, 128], strides = [1, 1]} : vector<8x384xf32> to vector<8x128xf32>
    %177 = arith.addf %175, %176 : vector<8x128xf32>
    %178 = arith.negf %177 : vector<8x128xf32>
    %179 = math.exp %178 : vector<8x128xf32>
    %cst_46 = arith.constant 1.000000e+00 : f32
    %180 = vector.broadcast %cst_46 : f32 to vector<8x128xf32>
    %181 = arith.addf %180, %179 : vector<8x128xf32>
    %182 = arith.divf %180, %181 : vector<8x128xf32>
    %183 = vector.extract_strided_slice %166 {offsets = [0, 256], sizes = [8, 128], strides = [1, 1]} : vector<8x384xf32> to vector<8x128xf32>
    %184 = vector.extract_strided_slice %163 {offsets = [0, 256], sizes = [8, 128], strides = [1, 1]} : vector<8x384xf32> to vector<8x128xf32>
    %185 = arith.mulf %174, %184 : vector<8x128xf32>
    %186 = arith.addf %183, %185 : vector<8x128xf32>
    %187 = math.tanh %186 : vector<8x128xf32>
    %188 = arith.subf %161, %187 : vector<8x128xf32>
    %189 = arith.mulf %182, %188 : vector<8x128xf32>
    %190 = arith.addf %187, %189 : vector<8x128xf32>
    %c6_i32 = arith.constant 6 : i32
    %cst_47 = arith.constant dense<0.000000e+00> : vector<8x384xf32>
    %191 = tpu.matmul %190, %12, %cst_47 {dimension_numbers = #tpu.dot_dimension_numbers<[1], [0], [0], [1], [0, 0, 1, 1], [], []>} : vector<8x128xf32>, vector<128x384xf32>, vector<8x384xf32> -> vector<8x384xf32>
    %192 = arith.addf %191, %15 : vector<8x384xf32>
    %193 = arith.index_cast %c6_i32 : i32 to index
    %c0_48 = arith.constant 0 : index
    %c0_49 = arith.constant 0 : index
    %194 = vector.load %arg10[%193, %c0_48, %c0_49] : memref<8x8x384xf32, #tpu.memory_space<vmem>>, vector<1x8x384xf32>
    %195 = vector.shape_cast %194 : vector<1x8x384xf32> to vector<8x384xf32>
    %196 = vector.extract_strided_slice %195 {offsets = [0, 0], sizes = [8, 128], strides = [1, 1]} : vector<8x384xf32> to vector<8x128xf32>
    %197 = vector.extract_strided_slice %192 {offsets = [0, 0], sizes = [8, 128], strides = [1, 1]} : vector<8x384xf32> to vector<8x128xf32>
    %198 = arith.addf %196, %197 : vector<8x128xf32>
    %199 = arith.negf %198 : vector<8x128xf32>
    %200 = math.exp %199 : vector<8x128xf32>
    %cst_50 = arith.constant 1.000000e+00 : f32
    %201 = vector.broadcast %cst_50 : f32 to vector<8x128xf32>
    %202 = arith.addf %201, %200 : vector<8x128xf32>
    %203 = arith.divf %201, %202 : vector<8x128xf32>
    %204 = vector.extract_strided_slice %195 {offsets = [0, 128], sizes = [8, 128], strides = [1, 1]} : vector<8x384xf32> to vector<8x128xf32>
    %205 = vector.extract_strided_slice %192 {offsets = [0, 128], sizes = [8, 128], strides = [1, 1]} : vector<8x384xf32> to vector<8x128xf32>
    %206 = arith.addf %204, %205 : vector<8x128xf32>
    %207 = arith.negf %206 : vector<8x128xf32>
    %208 = math.exp %207 : vector<8x128xf32>
    %cst_51 = arith.constant 1.000000e+00 : f32
    %209 = vector.broadcast %cst_51 : f32 to vector<8x128xf32>
    %210 = arith.addf %209, %208 : vector<8x128xf32>
    %211 = arith.divf %209, %210 : vector<8x128xf32>
    %212 = vector.extract_strided_slice %195 {offsets = [0, 256], sizes = [8, 128], strides = [1, 1]} : vector<8x384xf32> to vector<8x128xf32>
    %213 = vector.extract_strided_slice %192 {offsets = [0, 256], sizes = [8, 128], strides = [1, 1]} : vector<8x384xf32> to vector<8x128xf32>
    %214 = arith.mulf %203, %213 : vector<8x128xf32>
    %215 = arith.addf %212, %214 : vector<8x128xf32>
    %216 = math.tanh %215 : vector<8x128xf32>
    %217 = arith.subf %190, %216 : vector<8x128xf32>
    %218 = arith.mulf %211, %217 : vector<8x128xf32>
    %219 = arith.addf %216, %218 : vector<8x128xf32>
    %c7_i32 = arith.constant 7 : i32
    %cst_52 = arith.constant dense<0.000000e+00> : vector<8x384xf32>
    %220 = tpu.matmul %219, %12, %cst_52 {dimension_numbers = #tpu.dot_dimension_numbers<[1], [0], [0], [1], [0, 0, 1, 1], [], []>} : vector<8x128xf32>, vector<128x384xf32>, vector<8x384xf32> -> vector<8x384xf32>
    %221 = arith.addf %220, %15 : vector<8x384xf32>
    %222 = arith.index_cast %c7_i32 : i32 to index
    %c0_53 = arith.constant 0 : index
    %c0_54 = arith.constant 0 : index
    %223 = vector.load %arg10[%222, %c0_53, %c0_54] : memref<8x8x384xf32, #tpu.memory_space<vmem>>, vector<1x8x384xf32>
    %224 = vector.shape_cast %223 : vector<1x8x384xf32> to vector<8x384xf32>
    %225 = vector.extract_strided_slice %224 {offsets = [0, 0], sizes = [8, 128], strides = [1, 1]} : vector<8x384xf32> to vector<8x128xf32>
    %226 = vector.extract_strided_slice %221 {offsets = [0, 0], sizes = [8, 128], strides = [1, 1]} : vector<8x384xf32> to vector<8x128xf32>
    %227 = arith.addf %225, %226 : vector<8x128xf32>
    %228 = arith.negf %227 : vector<8x128xf32>
    %229 = math.exp %228 : vector<8x128xf32>
    %cst_55 = arith.constant 1.000000e+00 : f32
    %230 = vector.broadcast %cst_55 : f32 to vector<8x128xf32>
    %231 = arith.addf %230, %229 : vector<8x128xf32>
    %232 = arith.divf %230, %231 : vector<8x128xf32>
    %233 = vector.extract_strided_slice %224 {offsets = [0, 128], sizes = [8, 128], strides = [1, 1]} : vector<8x384xf32> to vector<8x128xf32>
    %234 = vector.extract_strided_slice %221 {offsets = [0, 128], sizes = [8, 128], strides = [1, 1]} : vector<8x384xf32> to vector<8x128xf32>
    %235 = arith.addf %233, %234 : vector<8x128xf32>
    %236 = arith.negf %235 : vector<8x128xf32>
    %237 = math.exp %236 : vector<8x128xf32>
    %cst_56 = arith.constant 1.000000e+00 : f32
    %238 = vector.broadcast %cst_56 : f32 to vector<8x128xf32>
    %239 = arith.addf %238, %237 : vector<8x128xf32>
    %240 = arith.divf %238, %239 : vector<8x128xf32>
    %241 = vector.extract_strided_slice %224 {offsets = [0, 256], sizes = [8, 128], strides = [1, 1]} : vector<8x384xf32> to vector<8x128xf32>
    %242 = vector.extract_strided_slice %221 {offsets = [0, 256], sizes = [8, 128], strides = [1, 1]} : vector<8x384xf32> to vector<8x128xf32>
    %243 = arith.mulf %232, %242 : vector<8x128xf32>
    %244 = arith.addf %241, %243 : vector<8x128xf32>
    %245 = math.tanh %244 : vector<8x128xf32>
    %246 = arith.subf %219, %245 : vector<8x128xf32>
    %247 = arith.mulf %240, %246 : vector<8x128xf32>
    %248 = arith.addf %245, %247 : vector<8x128xf32>
    %c8_i32 = arith.constant 8 : i32
    %c0_57 = arith.constant 0 : index
    %c0_58 = arith.constant 0 : index
    %249 = vector.load %arg11[%c0_57, %c0_58] : memref<8x128xf32, #tpu.memory_space<vmem>>, vector<8x128xf32>
    tpu.vector_store %arg11[%c0_57, %c0_58], %248 {strides = array<i32>} : memref<8x128xf32, #tpu.memory_space<vmem>>, vector<8x128xf32>,
    %c0_i32_59 = arith.constant 0 : i32
    %250 = arith.cmpi eq, %arg1, %c0_i32_59 : i32
    %251 = arith.extui %250 : i1 to i32
    %c0_i32_60 = arith.constant 0 : i32
    %252 = arith.cmpi ne, %251, %c0_i32_60 : i32
    scf.if %252 {
      %c0_61 = arith.constant 0 : index
      %c0_62 = arith.constant 0 : index
      %253 = vector.load %arg11[%c0_61, %c0_62] : memref<8x128xf32, #tpu.memory_space<vmem>>, vector<8x128xf32>
      %c0_63 = arith.constant 0 : index
      %c0_64 = arith.constant 0 : index
      %254 = vector.load %arg7[%c0_63, %c0_64] : memref<128x1xf32, #tpu.memory_space<vmem>>, vector<128x1xf32>
      %cst_65 = arith.constant dense<0.000000e+00> : vector<8x1xf32>
      %255 = tpu.matmul %253, %254, %cst_65 {dimension_numbers = #tpu.dot_dimension_numbers<[1], [0], [0], [1], [0, 0, 1, 1], [], []>} : vector<8x128xf32>, vector<128x1xf32>, vector<8x1xf32> -> vector<8x1xf32>
      %c0_66 = arith.constant 0 : index
      %c0_67 = arith.constant 0 : index
      %256 = vector.load %arg8[%c0_66, %c0_67] : memref<1x1xf32, #tpu.memory_space<vmem>>, vector<1x1xf32>
      %257 = vector.broadcast %256 : vector<1x1xf32> to vector<8x1xf32>
      %258 = arith.addf %255, %257 : vector<8x1xf32>
      %c0_68 = arith.constant 0 : index
      %c0_69 = arith.constant 0 : index
      %259 = vector.load %arg9[%c0_68, %c0_69] : memref<8x1xf32, #tpu.memory_space<vmem>>, vector<8x1xf32>
      tpu.vector_store %arg9[%c0_68, %c0_69], %258 {strides = array<i32>} : memref<8x1xf32, #tpu.memory_space<vmem>>, vector<8x1xf32>,
    } else {
    }
    return
  }
  func.func @transform_0(%arg0: i32, %arg1: i32) -> (i32, i32, i32) {
    %c0_i32 = arith.constant 0 : i32
    %c0_i32_0 = arith.constant 0 : i32
    return %arg1, %arg0, %c0_i32 : i32, i32, i32
  }
  func.func @transform_1(%arg0: i32, %arg1: i32) -> (i32, i32) {
    %c0_i32 = arith.constant 0 : i32
    %c0_i32_0 = arith.constant 0 : i32
    %c0_i32_1 = arith.constant 0 : i32
    return %c0_i32, %c0_i32_0 : i32, i32
  }
  func.func @transform_2(%arg0: i32, %arg1: i32) -> (i32, i32) {
    %c0_i32 = arith.constant 0 : i32
    %c0_i32_0 = arith.constant 0 : i32
    %c0_i32_1 = arith.constant 0 : i32
    return %c0_i32, %c0_i32_0 : i32, i32
  }
  func.func @transform_3(%arg0: i32, %arg1: i32) -> (i32, i32) {
    %c0_i32 = arith.constant 0 : i32
    %c0_i32_0 = arith.constant 0 : i32
    %c0_i32_1 = arith.constant 0 : i32
    return %c0_i32, %c0_i32_0 : i32, i32
  }
  func.func @transform_4(%arg0: i32, %arg1: i32) -> (i32, i32) {
    %c0_i32 = arith.constant 0 : i32
    %c0_i32_0 = arith.constant 0 : i32
    %c0_i32_1 = arith.constant 0 : i32
    return %c0_i32, %c0_i32_0 : i32, i32
  }
  func.func @transform_5(%arg0: i32, %arg1: i32) -> (i32, i32) {
    %c0_i32 = arith.constant 0 : i32
    %c0_i32_0 = arith.constant 0 : i32
    %c0_i32_1 = arith.constant 0 : i32
    return %c0_i32, %c0_i32_0 : i32, i32
  }
  func.func @transform_6(%arg0: i32, %arg1: i32) -> (i32, i32) {
    %c0_i32 = arith.constant 0 : i32
    %c0_i32_0 = arith.constant 0 : i32
    %c0_i32_1 = arith.constant 0 : i32
    return %c0_i32, %c0_i32_0 : i32, i32
  }
  func.func @transform_7(%arg0: i32, %arg1: i32) -> (i32, i32) {
    %c0_i32 = arith.constant 0 : i32
    %c0_i32_0 = arith.constant 0 : i32
    return %arg0, %c0_i32 : i32, i32
  }
}

</mosaic_0001>

<bundles_post_ra>
// kernel: gru_model_forward.1
= control target key start
LH: loop header
LB: loop body
LE: loop exit
PB: predicated region body
PF: predicated region fallthrough
CT: control target
= control target key end

     0   :  { %v2958_v3 = vmov 0.0   ;;  %vm64_vm0 = vcmask 130048   ;;  %v2959_v48 = vmov 0.0|0.0   ;;  %vm2960_vm1 = vmmov 0   ;;  %s3667_s1 = inlined_call_operand.vmem [shape: f32[16,384], index: 1, kind: input, shape index: {}]   ;;  %s3668_s0 = inlined_call_operand.vmem [shape: f32[8,8,16], index: 0, kind: input, shape index: {}]   ;;  %s3669_s2 = inlined_call_operand.vmem [shape: f32[128,384], index: 2, kind: input, shape index: {}]   ;;  %s3670_s3 = inlined_call_operand.vmem [shape: f32[1,384], index: 3, kind: input, shape index: {}]   ;;  %s3671_s4 = inlined_call_operand.vmem [shape: f32[1,384], index: 4, kind: input, shape index: {}]   ;;  %s3672_s5 = inlined_call_operand.vmem [shape: f32[128,1], index: 5, kind: input, shape index: {}]   ;;  %s3673_s6 = inlined_call_operand.<no memory space> [shape: f32[1,1], index: 6, kind: input, shape index: {}]   ;;  %s3674_s7 = inlined_call_operand.vmem [shape: f32[8,1], index: 7, kind: output, shape index: {}]  }
   0x1   :  { %v42_v0 = vld [vmem:[%s3667_s1 + $0x8] sm:$0xff]  ;;  %v45_v1 = vld [vmem:[%s3667_s1 + $0x20] sm:$0xff]  ;;  %153 = vmatprep.mubr.f32.mxu0 %v2958_v3  ;;  %v44_v5 = vld [vmem:[%s3667_s1 + $0x18] sm:$0xff]  ;;  %vm1814_vm2 = vcmask 7168  }
   0x2   :  { %v41_v2 = vld [vmem:[%s3667_s1] sm:$0xff]  ;;  %v2347_v4 = vpack.c.bf16 %v45_v1, %v42_v0  ;;  %v332_v7 = vld [vmem:[%s3669_s2 + $0x8] sm:$0xff]  ;;  %v334_v11 = vld [vmem:[%s3669_s2 + $0x18] sm:$0xff] }
   0x3   :  { %v33_v6 = vld [vmem:[%s3668_s0] sm:$0xff]  ;;  %v2349_v8 = vpack.c.bf16 %v44_v5, %v41_v2  ;;  %v338_v13 = vld [vmem:[%s3669_s2 + $0x38] sm:$0xff]  ;;  %v341_v14 = vld [vmem:[%s3669_s2 + $0x50] sm:$0xff] }
   0x4   :  { %v335_v9 = vld [vmem:[%s3669_s2 + $0x20] sm:$0xff]  ;;  %2020 = vmatprep.mubr.msk.f32.mxu1 %vm64_vm0, %v33_v6  ;;  %2348 = vmatprep.subr.bf16.mxu0 %v2347_v4  ;;  %v3041_v16 = vpack.c.bf16 %v341_v14, %v338_v13  ;;  %v337_v17 = vld [vmem:[%s3669_s2 + $0x30] sm:$0xff]  ;;  %v340_v18 = vld [vmem:[%s3669_s2 + $0x48] sm:$0xff] }
   0x5   :  { %v331_v10 = vld [vmem:[%s3669_s2] sm:$0xff]  ;;  %v3030_v12 = vpack.c.bf16 %v335_v9, %v332_v7  ;;  %2350 = vmatpush1.bf16.msra.mxu0 %v2349_v8  ;;  %v344_v19 = vld [vmem:[%s3669_s2 + $0x68] sm:$0xff]  ;;  %v3061_v22 = vpack.c.bf16 %v340_v18, %v337_v17  ;;  %v346_v25 = vld [vmem:[%s3669_s2 + $0x78] sm:$0xff] }
   0x6   :  { %v3038_v15 = vpack.c.bf16 %v334_v11, %v331_v10  ;;  %v347_v20 = vld [vmem:[%s3669_s2 + $0x80] sm:$0xff]  ;;  %v34_v21 = vld [vmem:[%s3668_s0 + $0x8] sm:$0xff]  ;;  %v350_v26 = vld [vmem:[%s3669_s2 + $0x98] sm:$0xff] }
   0x7   :  { %2356 = vmatprep.subr.bf16.mxu0 %v3030_v12  ;;  %v3064_v23 = vpack.c.bf16 %v347_v20, %v344_v19  ;;  %v343_v24 = vld [vmem:[%s3669_s2 + $0x60] sm:$0xff]  ;;  %v353_v27 = vld [vmem:[%s3669_s2 + $0xb0] sm:$0xff]  ;;  %v46_v29 = vld [vmem:[%s3667_s1 + $0x28] sm:$0xff] }
   0x8   :  { %1820 = vmatmul.mubr.msk.f32.vlgmr.msra.gmra.mrb[0].mxu0 %vm64_vm0, %v33_v6  ;;  %v43_v28 = vld [vmem:[%s3667_s1 + $0x10] sm:$0xff]  ;;  %v3090_v31 = vpack.c.bf16 %v346_v25, %v343_v24  ;;  %v3093_v33 = vpack.c.bf16 %v353_v27, %v350_v26  ;;  %v352_v35 = vld [vmem:[%s3669_s2 + $0xa8] sm:$0xff]  ;;  %v359_v38 = vld [vmem:[%s3669_s2 + $0xe0] sm:$0xff] }
   0x9   :  { %2358 = vmatpush1.bf16.msra.mxu0 %v3038_v15  ;;  %159 = vmatprep.mubr.f32.mxu0 %v2958_v3  ;;  %v35_v30 = vld [vmem:[%s3668_s0 + $0x10] sm:$0xff]  ;;  %v2351_v32 = vpack.c.bf16 %v46_v29, %v43_v28  ;;  %v356_v37 = vld [vmem:[%s3669_s2 + $0xc8] sm:$0xff]  ;;  %v36_v41 = vld [vmem:[%s3668_s0 + $0x18] sm:$0xff] }
   0xa   :  { %2360 = vmatprep.subr.bf16.mxu0 %v3041_v16  ;;  %v349_v34 = vld [vmem:[%s3669_s2 + $0x90] sm:$0xff]  ;;  %v336_v39 = vld [vmem:[%s3669_s2 + $0x28] sm:$0xff]  ;;  %v339_v43 = vld [vmem:[%s3669_s2 + $0x40] sm:$0xff]  ;;  %v3130_v45 = vpack.c.bf16 %v359_v38, %v356_v37 }
   0xb   :  { %v333_v36 = vld [vmem:[%s3669_s2 + $0x10] sm:$0xff]  ;;  %2352 = vmatprep.subr.bf16.mxu1 %v2351_v32  ;;  %v3121_v42 = vpack.c.bf16 %v352_v35, %v349_v34  ;;  %v342_v44 = vld [vmem:[%s3669_s2 + $0x58] sm:$0xff]  ;;  %v355_v46 = vld [vmem:[%s3669_s2 + $0xc0] sm:$0xff]  ;;  %v49_v35 = vlaneseq }
   0xc   :  { %1821 = vmatmul.mubr.msk.f32.gmra.mrb[2].mxu0 %vm64_vm0, %v34_v21  ;;  %2354 = vmatpush3.bf16.msra.mxu1 %v2351_v32  ;;  %v3114_v40 = vpack.c.bf16 %v336_v39, %v333_v36  ;;  %v358_v47 = vld [vmem:[%s3669_s2 + $0xd8] sm:$0xff]  ;;  %v365_v50 = vld [vmem:[%s3669_s2 + $0x110] sm:$0xff]  ;;  %v3148_v51 = vpack.c.bf16 %v342_v44, %v339_v43  ;;  %v37_v52 = vld [vmem:[%s3668_s0 + $0x20] sm:$0xff] }
   0xd   :  { %2362 = vmatpush1.bf16.msra.mxu0 %v3061_v22  ;;  %165 = vmatprep.mubr.f32.mxu0 %v2958_v3  ;;  %v362_v49 = vld [vmem:[%s3669_s2 + $0xf8] sm:$0xff]  ;;  %v3155_v53 = vpack.c.bf16 %v358_v47, %v355_v46  ;;  %v345_v54 = vld [vmem:[%s3669_s2 + $0x70] sm:$0xff]  ;;  %v348_v55 = vld [vmem:[%s3669_s2 + $0x88] sm:$0xff]  ;;  %v50_v36 = vshrl.u32 %v49_v35, 7 }
   0xe   :  { %2364 = vmatprep.subr.bf16.mxu0 %v3064_v23  ;;  %2387 = vmatprep.subr.bf16.mxu1 %v2959_v48  ;;  %v3164_v56 = vpack.c.bf16 %v365_v50, %v362_v49  ;;  %v361_v57 = vld [vmem:[%s3669_s2 + $0xf0] sm:$0xff]  ;;  %v364_v58 = vld [vmem:[%s3669_s2 + $0x108] sm:$0xff]  ;;  %v371_v60 = vld [vmem:[%s3669_s2 + $0x140] sm:$0xff]  ;;  %v3182_v61 = vpack.c.bf16 %v348_v55, %v345_v54 }
   0xf   :  { %2021 = vmatmul.mubr.msk.f32.vlgmr.msra.gmra.mrb[0].mxu1 %vm64_vm0, %v34_v21  ;;  %v368_v59 = vld [vmem:[%s3669_s2 + $0x128] sm:$0xff]  ;;  %v3189_v63 = vpack.c.bf16 %v364_v58, %v361_v57  ;;  %v351_v0 = vld [vmem:[%s3669_s2 + $0xa0] sm:$0xff]  ;;  %v354_v1 = vld [vmem:[%s3669_s2 + $0xb8] sm:$0xff]  ;;  %v59_v37 = vsub.s32 2, %v50_v36  ;;  %v51_v50 = vsub.s32 0, %v50_v36 }
  0x10   :  { %1822 = vmatmul.mubr.msk.f32.gmra.mrb[4].mxu0 %vm64_vm0, %v35_v30  ;;  %2389 = vmatpush3.bf16.msra.mxu1 %v3114_v40  ;;  %v38_v62 = vld [vmem:[%s3668_s0 + $0x28] sm:$0xff]  ;;  %v3198_v2 = vpack.c.bf16 %v371_v60, %v368_v59  ;;  %v367_v4 = vld [vmem:[%s3669_s2 + $0x120] sm:$0xff]  ;;  %v370_v5 = vld [vmem:[%s3669_s2 + $0x138] sm:$0xff]  ;;  %v3216_v8 = vpack.c.bf16 %v354_v1, %v351_v0  ;;  %v55_v0 = vsub.s32 1, %v50_v36 }
  0x11   :  { %2366 = vmatpush1.bf16.msra.mxu0 %v3090_v31  ;;  %171 = vmatprep.mubr.f32.mxu0 %v2958_v3  ;;  %v374_v6 = vld [vmem:[%s3669_s2 + $0x158] sm:$0xff]  ;;  %v377_v7 = vld [vmem:[%s3669_s2 + $0x170] sm:$0xff]  ;;  %v3223_v10 = vpack.c.bf16 %v370_v5, %v367_v4  ;;  %v360_v13 = vld [vmem:[%s3669_s2 + $0xe8] sm:$0xff] }
  0x12   :  { %2368 = vmatprep.subr.bf16.mxu0 %v3093_v33  ;;  %2390 = vmatprep.subr.bf16.mxu1 %v2959_v48  ;;  %v39_v9 = vld [vmem:[%s3668_s0 + $0x30] sm:$0xff]  ;;  %v3232_v14 = vpack.c.bf16 %v377_v7, %v374_v6  ;;  %v376_v18 = vld [vmem:[%s3669_s2 + $0x168] sm:$0xff]  ;;  %v40_v20 = vld [vmem:[%s3668_s0 + $0x38] sm:$0xff] }
  0x13   :  { %2023 = vmatprep.mubr.msk.f32.mxu1 %vm64_vm0, %v35_v30  ;;  %v357_v11 = vld [vmem:[%s3669_s2 + $0xd0] sm:$0xff]  ;;  %v363_v24 = vld [vmem:[%s3669_s2 + $0x100] sm:$0xff]  ;;  %v366_v25 = vld [vmem:[%s3669_s2 + $0x118] sm:$0xff] }
  0x14   :  { %1823 = vmatmul.mubr.msk.f32.gmra.mrb[6].mxu0 %vm64_vm0, %v36_v41  ;;  %2392 = vmatpush3.bf16.msra.mxu1 %v3148_v51  ;;  %v373_v17 = vld [vmem:[%s3669_s2 + $0x150] sm:$0xff]  ;;  %v3244_v19 = vpack.c.bf16 %v360_v13, %v357_v11  ;;  %v3264_v26 = vpack.c.bf16 %v366_v25, %v363_v24  ;;  %v372_v28 = vld [vmem:[%s3669_s2 + $0x148] sm:$0xff]  ;;  %v375_v30 = vld [vmem:[%s3669_s2 + $0x160] sm:$0xff] }
  0x15   :  { %2370 = vmatpush1.bf16.msra.mxu0 %v3121_v42  ;;  %177 = vmatprep.mubr.f32.mxu0 %v2958_v3  ;;  %v3251_v21 = vpack.c.bf16 %v376_v18, %v373_v17  ;;  %v369_v27 = vld [vmem:[%s3669_s2 + $0x130] sm:$0xff]  ;;  %v378_v32 = vld [vmem:[%s3669_s2 + $0x178] sm:$0xff]  ;;  %v47_v38 = vld [vmem:[%s3670_s3] sm:$0x7] }
  0x16   :  { %2372 = vmatprep.subr.bf16.mxu0 %v3130_v45  ;;  %2393 = vmatprep.subr.bf16.mxu1 %v2959_v48  ;;  %v3280_v29 = vpack.c.bf16 %v372_v28, %v369_v27  ;;  %v3295_v34 = vpack.c.bf16 %v378_v32, %v375_v30  ;;  %v60_v39 = vrot.slane %v47_v38, %v59_v37  ;;  %v379_v54 = vld [vmem:[%s3671_s4] sm:$0x7] }
  0x17   :  { %2024 = vmatmul.mubr.msk.f32.gmra.mrb[2].mxu1 %vm64_vm0, %v36_v41  ;;  %v52_v55 = vrot.slane %v47_v38, %v51_v50  ;;  %v384_v57 = vrot.slane %v379_v54, %v51_v50  ;;  %v56_v11 = vrot.slane %v47_v38, %v55_v0  ;;  %v388_v13 = vrot.slane %v379_v54, %v55_v0 }
  0x18   :  { %1824 = vmatmul.mubr.msk.f32.gmra.mrb[8].mxu0 %vm64_vm0, %v37_v52  ;;  %2395 = vmatpush3.bf16.msra.mxu1 %v3182_v61  ;;  %v3359_v36 = vrot.slane %v379_v54, %v59_v37 }
  0x19   :  { %2374 = vmatpush1.bf16.msra.mxu0 %v3155_v53  ;;  %183 = vmatprep.mubr.f32.mxu0 %v2958_v3  ;;  %v3356_v24 = vadd.f32 %v388_v13, %v56_v11 }
  0x1a   :  { %2376 = vmatprep.subr.bf16.mxu0 %v3164_v56  ;;  %2396 = vmatprep.subr.bf16.mxu1 %v2959_v48 }
  0x1b   :  { %2026 = vmatprep.mubr.msk.f32.mxu1 %vm64_vm0, %v37_v52 }
  0x1c   :  { %1825 = vmatmul.mubr.msk.f32.gmra.mrb[10].mxu0 %vm64_vm0, %v38_v62  ;;  %2398 = vmatpush3.bf16.msra.mxu1 %v3216_v8 }
  0x1d   :  { %2378 = vmatpush1.bf16.msra.mxu0 %v3189_v63  ;;  %189 = vmatprep.mubr.f32.mxu0 %v2958_v3 }
  0x1e   :  { %2380 = vmatprep.subr.bf16.mxu0 %v3198_v2  ;;  %2399 = vmatprep.subr.bf16.mxu1 %v2959_v48 }
  0x1f   :  { %2027 = vmatmul.mubr.msk.f32.gmra.mrb[4].mxu1 %vm64_vm0, %v38_v62  ;;  %v3347_v62 = vadd.f32 %v384_v57, %v52_v55 }
  0x20   :  { %1826 = vmatmul.mubr.msk.f32.gmra.mrb[12].mxu0 %vm64_vm0, %v39_v9  ;;  %2401 = vmatpush3.bf16.msra.mxu1 %v3244_v19 }
  0x21   :  { %2382 = vmatpush1.bf16.msra.mxu0 %v3223_v10  ;;  %195 = vmatprep.mubr.f32.mxu0 %v2958_v3 }
  0x22   :  { %2384 = vmatprep.subr.bf16.mxu0 %v3232_v14  ;;  %2402 = vmatprep.subr.bf16.mxu1 %v2959_v48 }
  0x23   :  { %2029 = vmatprep.mubr.msk.f32.mxu1 %vm64_vm0, %v39_v9 }
  0x24   :  { %1827 = vmatmul.mubr.msk.f32.gmra.mrb[14].mxu0 %vm64_vm0, %v40_v20  ;;  %2030 = vmatmul.mubr.msk.f32.gmra.mrb[6].mxu1 %vm64_vm0, %v40_v20 }
  0x25   :  { %2386 = vmatpush1.bf16.msra.mxu0 %v3251_v21  ;;  %461 = vmatprep.mubr.f32.mxu0 %v2958_v3 }
  0x26   :  { %2412 = vmatprep.subr.bf16.mxu0 %v3030_v12  ;;  %2404 = vmatpush3.bf16.msra.mxu1 %v3264_v26 }
  0x27   :  { %2405 = vmatprep.subr.bf16.mxu1 %v2959_v48  ;;  %2064 = vmatprep.mubr.msk.f32.mxu1 %vm2960_vm1, %v2958_v3 }
  0x28   :  { %462 = vmatmul.mubr.f32.vlgmr.msra.gmra.mrb[0].mxu0 %v2958_v3 }
  0x29   :  { %2414 = vmatpush1.bf16.msra.mxu0 %v3038_v15  ;;  %625 = vmatprep.mubr.f32.mxu0 %v2958_v3 }
  0x2a   :  { %2416 = vmatprep.subr.bf16.mxu0 %v3041_v16  ;;  %2407 = vmatpush3.bf16.msra.mxu1 %v3280_v29 }
  0x2b   :  { %2408 = vmatprep.subr.bf16.mxu1 %v2959_v48 }
  0x2d   :  { %2418 = vmatpush1.bf16.msra.mxu0 %v3061_v22 }
  0x2e   :  { %2420 = vmatprep.subr.bf16.mxu0 %v3064_v23  ;;  %2410 = vmatpush3.bf16.msra.mxu1 %v3295_v34 }
  0x2f   :  { %2443 = vmatprep.subr.bf16.mxu1 %v2959_v48 }
  0x31   :  { %2422 = vmatpush1.bf16.msra.mxu0 %v3090_v31  ;;  %2065 = vmatmul.mubr.f32.vlgmr.msra.gmra.mrb[8].mxu1 %v2958_v3 }
  0x32   :  { %2424 = vmatprep.subr.bf16.mxu0 %v3093_v33  ;;  %2445 = vmatpush3.bf16.msra.mxu1 %v3114_v40 }
  0x33   :  { %2099 = vmatprep.mubr.msk.f32.mxu1 %vm2960_vm1, %v2958_v3  ;;  %2446 = vmatprep.subr.bf16.mxu1 %v2959_v48 }
  0x35   :  { %2426 = vmatpush1.bf16.msra.mxu0 %v3121_v42 }
  0x36   :  { %2428 = vmatprep.subr.bf16.mxu0 %v3130_v45  ;;  %2448 = vmatpush3.bf16.msra.mxu1 %v3148_v51 }
  0x37   :  { %2449 = vmatprep.subr.bf16.mxu1 %v2959_v48 }
  0x39   :  { %2430 = vmatpush1.bf16.msra.mxu0 %v3155_v53 }
  0x3a   :  { %2432 = vmatprep.subr.bf16.mxu0 %v3164_v56  ;;  %2451 = vmatpush3.bf16.msra.mxu1 %v3182_v61 }
  0x3b   :  { %2452 = vmatprep.subr.bf16.mxu1 %v2959_v48 }
  0x3d   :  { %2434 = vmatpush1.bf16.msra.mxu0 %v3189_v63 }
  0x3e   :  { %2436 = vmatprep.subr.bf16.mxu0 %v3198_v2  ;;  %2454 = vmatpush3.bf16.msra.mxu1 %v3216_v8 }
  0x3f   :  { %2455 = vmatprep.subr.bf16.mxu1 %v2959_v48 }
  0x41   :  { %2438 = vmatpush1.bf16.msra.mxu0 %v3223_v10 }
  0x42   :  { %2440 = vmatprep.subr.bf16.mxu0 %v3232_v14  ;;  %2457 = vmatpush3.bf16.msra.mxu1 %v3244_v19 }
  0x43   :  { %2458 = vmatprep.subr.bf16.mxu1 %v2959_v48 }
  0x45   :  { %2442 = vmatpush1.bf16.msra.mxu0 %v3251_v21 }
  0x46   :  { %2468 = vmatprep.subr.bf16.mxu0 %v3030_v12  ;;  %2460 = vmatpush3.bf16.msra.mxu1 %v3264_v26 }
  0x47   :  { %2461 = vmatprep.subr.bf16.mxu1 %v2959_v48 }
  0x4a   :  { %2463 = vmatpush3.bf16.msra.mxu1 %v3280_v29 }
  0x4b   :  { %2464 = vmatprep.subr.bf16.mxu1 %v2959_v48 }
  0x4e   :  { %2466 = vmatpush3.bf16.msra.mxu1 %v3295_v34 }
  0x4f   :  { %2499 = vmatprep.subr.bf16.mxu1 %v2959_v48 }
  0xe2   :  { %v2022_v41 = vpop.f32.mrb[0].mxu1 }
  0xe3   :  { %v3336_v43 = vadd.f32 %v2022_v41, %v60_v39  ;;  %v268_v44 = vpop.f32.mrb[1].mxu1 }
  0xea   :  { %v2025_v46 = vpop.f32.mrb[2].mxu1 }
  0xeb   :  { %v3338_v47 = vadd.f32 %v2025_v46, %v60_v39  ;;  %v278_v49 = vpop.f32.mrb[3].mxu1 }
  0xec   :  { %v3340_v52 = vadd.f32 %v278_v49, %v60_v39  ;;  %v269_v49 = vadd.f32 %v268_v44, %v60_v39 }
  0xf2   :  { %v2028_v58 = vpop.f32.mrb[4].mxu1 }
  0xf3   :  { %v3345_v59 = vadd.f32 %v2028_v58, %v60_v39  ;;  %v288_v60 = vpop.f32.mrb[5].mxu1 }
  0xf4   :  { %v3349_v1 = vadd.f32 %v288_v60, %v60_v39 }
  0xf7   :  { %v2031_v4 = vpop.f32.mrb[6].mxu1 }
  0xf8   :  { %v3351_v6 = vadd.f32 %v2031_v4, %v60_v39  ;;  %v298_v7 = vpop.f32.mrb[7].mxu1 }
  0xf9   :  { %v3354_v18 = vadd.f32 %v298_v7, %v60_v39 }
  0xfb   :  { %v463_v5 = vpop.f32.mrb[0].mxu0 }
  0xfc   :  { %v2828_v9 = vadd.f32 %v3347_v62, %v463_v5  ;;  %v465_v17 = vpop.f32.mrb[1].mxu0 }
  0xfd   :  { %v2830_v25 = vadd.f32 %v3356_v24, %v465_v17 }
  0xfe   :  { %v1836_v20 = vmul.f32 -1.442695, %v2828_v9 }
  0xff   :  { %v1837_v30 = vmul.f32 -1.442695, %v2830_v25 }
 0x100   :  { %2878 = vpow2.f32 %v1836_v20 }
 0x101   :  { %2880 = vpow2.f32 %v1837_v30 }
 0x104   :  { %v534_v27 = vpop.f32.mrb[8].mxu1 }
 0x105   :  { %v2066_v28 = vpop.f32.mrb[9].mxu1  ;;  %v535_v38 = vadd.f32 %v534_v27, %v3359_v36 }
 0x10a   :  { %v2879_v32 = vpop.eup %2878 }
 0x10b   :  { %v545_v35 = vadd.f32 1.0, %v2879_v32  ;;  %v2881_v41 = vpop.eup %2880 }
 0x10c   :  { %v552_v55 = vadd.f32 1.0, %v2881_v41 }
 0x10d   :  { %2882 = vrcp.f32 %v545_v35 }
 0x117   :  { %v2883_v46 = vpop.eup %2882 }
 0x118   :  { %v555_v50 = vmul.f32 %v2883_v46, %v535_v38 }
 0x11a   :  { %v556_v57 = vadd.f32 %v555_v50, %v269_v49 }
 0x11c   :  { %2884 = vtanh.f32 %v556_v57 }
 0x11d   :  { %2886 = vrcp.f32 %v552_v55 }
 0x126   :  { %v2885_v58 = vpop.eup %2884 }
 0x127   :  { %v558_v60 = vsub.f32 0.0, %v2885_v58  ;;  %v2887_v0 = vpop.eup %2886 }
 0x129   :  { %v559_v4 = vmul.f32 %v2887_v0, %v558_v60 }
 0x12b   :  { %v560_v5 = vadd.f32 %v2885_v58, %v559_v4 }
 0x12d   :  { %626 = vmatmul.mubr.f32.vlgmr.msra.gmra.mrb[2].mxu0 %v560_v5  ;;  %2100 = vmatmul.mubr.f32.vlgmr.msra.gmra.mrb[10].mxu1 %v560_v5 }
 0x12e   :  { %2470 = vmatpush1.bf16.msra.mxu0 %v3038_v15  ;;  %2501 = vmatpush3.bf16.msra.mxu1 %v3114_v40 }
 0x12f   :  { %2472 = vmatprep.subr.bf16.mxu0 %v3041_v16  ;;  %2502 = vmatprep.subr.bf16.mxu1 %v2959_v48 }
 0x130   :  { %790 = vmatprep.mubr.f32.mxu0 %v2958_v3  ;;  %2134 = vmatprep.mubr.msk.f32.mxu1 %vm2960_vm1, %v2958_v3 }
 0x132   :  { %2474 = vmatpush1.bf16.msra.mxu0 %v3061_v22  ;;  %2504 = vmatpush3.bf16.msra.mxu1 %v3148_v51 }
 0x133   :  { %2476 = vmatprep.subr.bf16.mxu0 %v3064_v23  ;;  %2505 = vmatprep.subr.bf16.mxu1 %v2959_v48 }
 0x136   :  { %2478 = vmatpush1.bf16.msra.mxu0 %v3090_v31  ;;  %2507 = vmatpush3.bf16.msra.mxu1 %v3182_v61 }
 0x137   :  { %2480 = vmatprep.subr.bf16.mxu0 %v3093_v33  ;;  %2508 = vmatprep.subr.bf16.mxu1 %v2959_v48 }
 0x13a   :  { %2482 = vmatpush1.bf16.msra.mxu0 %v3121_v42  ;;  %2510 = vmatpush3.bf16.msra.mxu1 %v3216_v8 }
 0x13b   :  { %2484 = vmatprep.subr.bf16.mxu0 %v3130_v45  ;;  %2511 = vmatprep.subr.bf16.mxu1 %v2959_v48 }
 0x13e   :  { %2486 = vmatpush1.bf16.msra.mxu0 %v3155_v53  ;;  %2513 = vmatpush3.bf16.msra.mxu1 %v3244_v19 }
 0x13f   :  { %2488 = vmatprep.subr.bf16.mxu0 %v3164_v56  ;;  %2514 = vmatprep.subr.bf16.mxu1 %v2959_v48 }
 0x142   :  { %2490 = vmatpush1.bf16.msra.mxu0 %v3189_v63  ;;  %2516 = vmatpush3.bf16.msra.mxu1 %v3264_v26 }
 0x143   :  { %2492 = vmatprep.subr.bf16.mxu0 %v3198_v2  ;;  %2517 = vmatprep.subr.bf16.mxu1 %v2959_v48 }
 0x146   :  { %2494 = vmatpush1.bf16.msra.mxu0 %v3223_v10  ;;  %2519 = vmatpush3.bf16.msra.mxu1 %v3280_v29 }
 0x147   :  { %2496 = vmatprep.subr.bf16.mxu0 %v3232_v14  ;;  %2520 = vmatprep.subr.bf16.mxu1 %v2959_v48 }
 0x14a   :  { %2498 = vmatpush1.bf16.msra.mxu0 %v3251_v21  ;;  %2522 = vmatpush3.bf16.msra.mxu1 %v3295_v34 }
 0x14b   :  { %2524 = vmatprep.subr.bf16.mxu0 %v3030_v12  ;;  %2555 = vmatprep.subr.bf16.mxu1 %v2959_v48 }
 0x200   :  { %v627_v37 = vpop.f32.mrb[2].mxu0  ;;  %v698_v39 = vpop.f32.mrb[10].mxu1 }
 0x201   :  { %v2832_v44 = vadd.f32 %v3347_v62, %v627_v37  ;;  %v629_v54 = vpop.f32.mrb[3].mxu0  ;;  %v2101_v7 = vpop.f32.mrb[11].mxu1  ;;  %v699_v27 = vadd.f32 %v698_v39, %v3359_v36 }
 0x202   :  { %v2834_v11 = vadd.f32 %v3356_v24, %v629_v54 }
 0x203   :  { %v1838_v9 = vmul.f32 -1.442695, %v2832_v44 }
 0x204   :  { %v1839_v13 = vmul.f32 -1.442695, %v2834_v11 }
 0x205   :  { %2888 = vpow2.f32 %v1838_v9 }
 0x206   :  { %2890 = vpow2.f32 %v1839_v13 }
 0x20f   :  { %v2889_v17 = vpop.eup %2888 }
 0x210   :  { %v710_v20 = vadd.f32 1.0, %v2889_v17  ;;  %v2891_v25 = vpop.eup %2890 }
 0x211   :  { %v717_v35 = vadd.f32 1.0, %v2891_v25 }
 0x212   :  { %2892 = vrcp.f32 %v710_v20 }
 0x21c   :  { %v2893_v28 = vpop.eup %2892 }
 0x21d   :  { %v720_v30 = vmul.f32 %v2893_v28, %v699_v27 }
 0x21f   :  { %v721_v32 = vadd.f32 %v720_v30, %v3336_v43 }
 0x221   :  { %2894 = vtanh.f32 %v721_v32 }
 0x222   :  { %2896 = vrcp.f32 %v717_v35 }
 0x22b   :  { %v2895_v38 = vpop.eup %2894 }
 0x22c   :  { %v723_v41 = vsub.f32 %v560_v5, %v2895_v38  ;;  %v2897_v46 = vpop.eup %2896 }
 0x22e   :  { %v724_v49 = vmul.f32 %v2897_v46, %v723_v41 }
 0x230   :  { %v725_v50 = vadd.f32 %v2895_v38, %v724_v49 }
 0x232   :  { %791 = vmatmul.mubr.f32.vlgmr.msra.gmra.mrb[4].mxu0 %v725_v50  ;;  %2135 = vmatmul.mubr.f32.vlgmr.msra.gmra.mrb[12].mxu1 %v725_v50 }
 0x233   :  { %2526 = vmatpush1.bf16.msra.mxu0 %v3038_v15  ;;  %2557 = vmatpush3.bf16.msra.mxu1 %v3114_v40 }
 0x234   :  { %2528 = vmatprep.subr.bf16.mxu0 %v3041_v16  ;;  %2558 = vmatprep.subr.bf16.mxu1 %v2959_v48 }
 0x235   :  { %955 = vmatprep.mubr.f32.mxu0 %v2958_v3  ;;  %2169 = vmatprep.mubr.msk.f32.mxu1 %vm2960_vm1, %v2958_v3 }
 0x237   :  { %2530 = vmatpush1.bf16.msra.mxu0 %v3061_v22  ;;  %2560 = vmatpush3.bf16.msra.mxu1 %v3148_v51 }
 0x238   :  { %2532 = vmatprep.subr.bf16.mxu0 %v3064_v23  ;;  %2561 = vmatprep.subr.bf16.mxu1 %v2959_v48 }
 0x23b   :  { %2534 = vmatpush1.bf16.msra.mxu0 %v3090_v31  ;;  %2563 = vmatpush3.bf16.msra.mxu1 %v3182_v61 }
 0x23c   :  { %2536 = vmatprep.subr.bf16.mxu0 %v3093_v33  ;;  %2564 = vmatprep.subr.bf16.mxu1 %v2959_v48 }
 0x23f   :  { %2538 = vmatpush1.bf16.msra.mxu0 %v3121_v42  ;;  %2566 = vmatpush3.bf16.msra.mxu1 %v3216_v8 }
 0x240   :  { %2540 = vmatprep.subr.bf16.mxu0 %v3130_v45  ;;  %2567 = vmatprep.subr.bf16.mxu1 %v2959_v48 }
 0x243   :  { %2542 = vmatpush1.bf16.msra.mxu0 %v3155_v53  ;;  %2569 = vmatpush3.bf16.msra.mxu1 %v3244_v19 }
 0x244   :  { %2544 = vmatprep.subr.bf16.mxu0 %v3164_v56  ;;  %2570 = vmatprep.subr.bf16.mxu1 %v2959_v48 }
 0x247   :  { %2546 = vmatpush1.bf16.msra.mxu0 %v3189_v63  ;;  %2572 = vmatpush3.bf16.msra.mxu1 %v3264_v26 }
 0x248   :  { %2548 = vmatprep.subr.bf16.mxu0 %v3198_v2  ;;  %2573 = vmatprep.subr.bf16.mxu1 %v2959_v48 }
 0x24b   :  { %2550 = vmatpush1.bf16.msra.mxu0 %v3223_v10  ;;  %2575 = vmatpush3.bf16.msra.mxu1 %v3280_v29 }
 0x24c   :  { %2552 = vmatprep.subr.bf16.mxu0 %v3232_v14  ;;  %2576 = vmatprep.subr.bf16.mxu1 %v2959_v48 }
 0x24f   :  { %2554 = vmatpush1.bf16.msra.mxu0 %v3251_v21  ;;  %2578 = vmatpush3.bf16.msra.mxu1 %v3295_v34 }
 0x250   :  { %2580 = vmatprep.subr.bf16.mxu0 %v3030_v12  ;;  %2611 = vmatprep.subr.bf16.mxu1 %v2959_v48 }
 0x305   :  { %v792_v43 = vpop.f32.mrb[4].mxu0  ;;  %v863_v55 = vpop.f32.mrb[12].mxu1 }
 0x306   :  { %v2836_v57 = vadd.f32 %v3347_v62, %v792_v43  ;;  %v794_v58 = vpop.f32.mrb[5].mxu0  ;;  %v2136_v60 = vpop.f32.mrb[13].mxu1  ;;  %v864_v54 = vadd.f32 %v863_v55, %v3359_v36 }
 0x307   :  { %v2838_v4 = vadd.f32 %v3356_v24, %v794_v58 }
 0x308   :  { %v1840_v0 = vmul.f32 -1.442695, %v2836_v57 }
 0x309   :  { %v1841_v5 = vmul.f32 -1.442695, %v2838_v4 }
 0x30a   :  { %2898 = vpow2.f32 %v1840_v0 }
 0x30b   :  { %2900 = vpow2.f32 %v1841_v5 }
 0x314   :  { %v2899_v37 = vpop.eup %2898 }
 0x315   :  { %v875_v39 = vadd.f32 1.0, %v2899_v37  ;;  %v2901_v44 = vpop.eup %2900 }
 0x316   :  { %v882_v13 = vadd.f32 1.0, %v2901_v44 }
 0x317   :  { %2902 = vrcp.f32 %v875_v39 }
 0x321   :  { %v2903_v7 = vpop.eup %2902 }
 0x322   :  { %v885_v9 = vmul.f32 %v2903_v7, %v864_v54 }
 0x324   :  { %v886_v11 = vadd.f32 %v885_v9, %v3340_v52 }
 0x326   :  { %2904 = vtanh.f32 %v886_v11 }
 0x327   :  { %2906 = vrcp.f32 %v882_v13 }
 0x330   :  { %v2905_v17 = vpop.eup %2904 }
 0x331   :  { %v888_v20 = vsub.f32 %v725_v50, %v2905_v17  ;;  %v2907_v25 = vpop.eup %2906 }
 0x333   :  { %v889_v27 = vmul.f32 %v2907_v25, %v888_v20 }
 0x335   :  { %v890_v28 = vadd.f32 %v2905_v17, %v889_v27 }
 0x337   :  { %956 = vmatmul.mubr.f32.vlgmr.msra.gmra.mrb[6].mxu0 %v890_v28  ;;  %2170 = vmatmul.mubr.f32.vlgmr.msra.gmra.mrb[14].mxu1 %v890_v28 }
 0x338   :  { %2582 = vmatpush1.bf16.msra.mxu0 %v3038_v15  ;;  %2613 = vmatpush3.bf16.msra.mxu1 %v3114_v40 }
 0x339   :  { %2584 = vmatprep.subr.bf16.mxu0 %v3041_v16  ;;  %2614 = vmatprep.subr.bf16.mxu1 %v2959_v48 }
 0x33a   :  { %1120 = vmatprep.mubr.f32.mxu0 %v2958_v3  ;;  %2204 = vmatprep.mubr.msk.f32.mxu1 %vm2960_vm1, %v2958_v3 }
 0x33c   :  { %2586 = vmatpush1.bf16.msra.mxu0 %v3061_v22  ;;  %2616 = vmatpush3.bf16.msra.mxu1 %v3148_v51 }
 0x33d   :  { %2588 = vmatprep.subr.bf16.mxu0 %v3064_v23  ;;  %2617 = vmatprep.subr.bf16.mxu1 %v2959_v48 }
 0x340   :  { %2590 = vmatpush1.bf16.msra.mxu0 %v3090_v31  ;;  %2619 = vmatpush3.bf16.msra.mxu1 %v3182_v61 }
 0x341   :  { %2592 = vmatprep.subr.bf16.mxu0 %v3093_v33  ;;  %2620 = vmatprep.subr.bf16.mxu1 %v2959_v48 }
 0x344   :  { %2594 = vmatpush1.bf16.msra.mxu0 %v3121_v42  ;;  %2622 = vmatpush3.bf16.msra.mxu1 %v3216_v8 }
 0x345   :  { %2596 = vmatprep.subr.bf16.mxu0 %v3130_v45  ;;  %2623 = vmatprep.subr.bf16.mxu1 %v2959_v48 }
 0x348   :  { %2598 = vmatpush1.bf16.msra.mxu0 %v3155_v53  ;;  %2625 = vmatpush3.bf16.msra.mxu1 %v3244_v19 }
 0x349   :  { %2600 = vmatprep.subr.bf16.mxu0 %v3164_v56  ;;  %2626 = vmatprep.subr.bf16.mxu1 %v2959_v48 }
 0x34c   :  { %2602 = vmatpush1.bf16.msra.mxu0 %v3189_v63  ;;  %2628 = vmatpush3.bf16.msra.mxu1 %v3264_v26 }
 0x34d   :  { %2604 = vmatprep.subr.bf16.mxu0 %v3198_v2  ;;  %2629 = vmatprep.subr.bf16.mxu1 %v2959_v48 }
 0x350   :  { %2606 = vmatpush1.bf16.msra.mxu0 %v3223_v10  ;;  %2631 = vmatpush3.bf16.msra.mxu1 %v3280_v29 }
 0x351   :  { %2608 = vmatprep.subr.bf16.mxu0 %v3232_v14  ;;  %2632 = vmatprep.subr.bf16.mxu1 %v2959_v48 }
 0x354   :  { %2610 = vmatpush1.bf16.msra.mxu0 %v3251_v21  ;;  %2634 = vmatpush3.bf16.msra.mxu1 %v3295_v34 }
 0x355   :  { %2636 = vmatprep.subr.bf16.mxu0 %v3030_v12  ;;  %2667 = vmatprep.subr.bf16.mxu1 %v2959_v48 }
 0x40a   :  { %v957_v52 = vpop.f32.mrb[6].mxu0  ;;  %v1028_v30 = vpop.f32.mrb[14].mxu1 }
 0x40b   :  { %v2840_v32 = vadd.f32 %v3347_v62, %v957_v52  ;;  %v959_v35 = vpop.f32.mrb[7].mxu0  ;;  %v2171_v38 = vpop.f32.mrb[15].mxu1  ;;  %v1029_v57 = vadd.f32 %v1028_v30, %v3359_v36 }
 0x40c   :  { %v2842_v46 = vadd.f32 %v3356_v24, %v959_v35 }
 0x40d   :  { %v1842_v41 = vmul.f32 -1.442695, %v2840_v32 }
 0x40e   :  { %v1843_v49 = vmul.f32 -1.442695, %v2842_v46 }
 0x40f   :  { %2908 = vpow2.f32 %v1842_v41 }
 0x410   :  { %2910 = vpow2.f32 %v1843_v49 }
 0x419   :  { %v2909_v50 = vpop.eup %2908 }
 0x41a   :  { %v1040_v43 = vadd.f32 1.0, %v2909_v50  ;;  %v2911_v55 = vpop.eup %2910 }
 0x41b   :  { %v1047_v4 = vadd.f32 1.0, %v2911_v55 }
 0x41c   :  { %2912 = vrcp.f32 %v1040_v43 }
 0x426   :  { %v2913_v58 = vpop.eup %2912 }
 0x427   :  { %v1050_v60 = vmul.f32 %v2913_v58, %v1029_v57 }
 0x429   :  { %v1051_v0 = vadd.f32 %v1050_v60, %v3338_v47 }
 0x42b   :  { %2914 = vtanh.f32 %v1051_v0 }
 0x42c   :  { %2916 = vrcp.f32 %v1047_v4 }
 0x435   :  { %v2915_v5 = vpop.eup %2914 }
 0x436   :  { %v1053_v37 = vsub.f32 %v890_v28, %v2915_v5  ;;  %v2917_v39 = vpop.eup %2916 }
 0x438   :  { %v1054_v44 = vmul.f32 %v2917_v39, %v1053_v37 }
 0x43a   :  { %v1055_v54 = vadd.f32 %v2915_v5, %v1054_v44 }
 0x43c   :  { %1121 = vmatmul.mubr.f32.vlgmr.msra.gmra.mrb[8].mxu0 %v1055_v54  ;;  %2205 = vmatmul.mubr.f32.vlgmr.msra.gmra.mrb[16].mxu1 %v1055_v54 }
 0x43d   :  { %2638 = vmatpush1.bf16.msra.mxu0 %v3038_v15  ;;  %2669 = vmatpush3.bf16.msra.mxu1 %v3114_v40 }
 0x43e   :  { %2640 = vmatprep.subr.bf16.mxu0 %v3041_v16  ;;  %2670 = vmatprep.subr.bf16.mxu1 %v2959_v48 }
 0x43f   :  { %1285 = vmatprep.mubr.f32.mxu0 %v2958_v3  ;;  %2239 = vmatprep.mubr.msk.f32.mxu1 %vm2960_vm1, %v2958_v3 }
 0x441   :  { %2642 = vmatpush1.bf16.msra.mxu0 %v3061_v22  ;;  %2672 = vmatpush3.bf16.msra.mxu1 %v3148_v51 }
 0x442   :  { %2644 = vmatprep.subr.bf16.mxu0 %v3064_v23  ;;  %2673 = vmatprep.subr.bf16.mxu1 %v2959_v48 }
 0x445   :  { %2646 = vmatpush1.bf16.msra.mxu0 %v3090_v31  ;;  %2675 = vmatpush3.bf16.msra.mxu1 %v3182_v61 }
 0x446   :  { %2648 = vmatprep.subr.bf16.mxu0 %v3093_v33  ;;  %2676 = vmatprep.subr.bf16.mxu1 %v2959_v48 }
 0x449   :  { %2650 = vmatpush1.bf16.msra.mxu0 %v3121_v42  ;;  %2678 = vmatpush3.bf16.msra.mxu1 %v3216_v8 }
 0x44a   :  { %2652 = vmatprep.subr.bf16.mxu0 %v3130_v45  ;;  %2679 = vmatprep.subr.bf16.mxu1 %v2959_v48 }
 0x44d   :  { %2654 = vmatpush1.bf16.msra.mxu0 %v3155_v53  ;;  %2681 = vmatpush3.bf16.msra.mxu1 %v3244_v19 }
 0x44e   :  { %2656 = vmatprep.subr.bf16.mxu0 %v3164_v56  ;;  %2682 = vmatprep.subr.bf16.mxu1 %v2959_v48 }
 0x451   :  { %2658 = vmatpush1.bf16.msra.mxu0 %v3189_v63  ;;  %2684 = vmatpush3.bf16.msra.mxu1 %v3264_v26 }
 0x452   :  { %2660 = vmatprep.subr.bf16.mxu0 %v3198_v2  ;;  %2685 = vmatprep.subr.bf16.mxu1 %v2959_v48 }
 0x455   :  { %2662 = vmatpush1.bf16.msra.mxu0 %v3223_v10  ;;  %2687 = vmatpush3.bf16.msra.mxu1 %v3280_v29 }
 0x456   :  { %2664 = vmatprep.subr.bf16.mxu0 %v3232_v14  ;;  %2688 = vmatprep.subr.bf16.mxu1 %v2959_v48 }
 0x459   :  { %2666 = vmatpush1.bf16.msra.mxu0 %v3251_v21  ;;  %2690 = vmatpush3.bf16.msra.mxu1 %v3295_v34 }
 0x45a   :  { %2692 = vmatprep.subr.bf16.mxu0 %v3030_v12  ;;  %2723 = vmatprep.subr.bf16.mxu1 %v2959_v48 }
 0x50f   :  { %v1122_v47 = vpop.f32.mrb[8].mxu0  ;;  %v1193_v7 = vpop.f32.mrb[16].mxu1 }
 0x510   :  { %v2844_v9 = vadd.f32 %v3347_v62, %v1122_v47  ;;  %v1124_v11 = vpop.f32.mrb[9].mxu0  ;;  %v2206_v13 = vpop.f32.mrb[17].mxu1  ;;  %v1194_v30 = vadd.f32 %v1193_v7, %v3359_v36 }
 0x511   :  { %v2846_v20 = vadd.f32 %v3356_v24, %v1124_v11 }
 0x512   :  { %v1844_v17 = vmul.f32 -1.442695, %v2844_v9 }
 0x513   :  { %v1845_v25 = vmul.f32 -1.442695, %v2846_v20 }
 0x514   :  { %2918 = vpow2.f32 %v1844_v17 }
 0x515   :  { %2920 = vpow2.f32 %v1845_v25 }
 0x51e   :  { %v2919_v27 = vpop.eup %2918 }
 0x51f   :  { %v1205_v28 = vadd.f32 1.0, %v2919_v27  ;;  %v2921_v52 = vpop.eup %2920 }
 0x520   :  { %v1212_v41 = vadd.f32 1.0, %v2921_v52  ;;  %v1725_v52 = vld [vmem:[%s3672_s5 + $0x20] sm:$0xff] }
 0x521   :  { %2922 = vrcp.f32 %v1205_v28 }
 0x52b   :  { %v2923_v32 = vpop.eup %2922 }
 0x52c   :  { %v1215_v35 = vmul.f32 %v2923_v32, %v1194_v30  ;;  %v1726_v30 = vld [vmem:[%s3672_s5 + $0x28] sm:$0xff] }
 0x52d   :  { %v2810_v32 = vpack.c.bf16 %v1726_v30, %v1725_v52 }
 0x52e   :  { %v1216_v38 = vadd.f32 %v1215_v35, %v3349_v1  ;;  %v1727_v35 = vld [vmem:[%s3672_s5 + $0x30] sm:$0xff] }
 0x530   :  { %2924 = vtanh.f32 %v1216_v38  ;;  %v1728_v38 = vld [vmem:[%s3672_s5 + $0x38] sm:$0xff] }
 0x531   :  { %2926 = vrcp.f32 %v1212_v41  ;;  %v2813_v41 = vpack.c.bf16 %v1728_v38, %v1727_v35 }
 0x53a   :  { %v2925_v46 = vpop.eup %2924 }
 0x53b   :  { %v1218_v49 = vsub.f32 %v1055_v54, %v2925_v46  ;;  %v2927_v50 = vpop.eup %2926 }
 0x53d   :  { %v1219_v43 = vmul.f32 %v2927_v50, %v1218_v49  ;;  %v1730_v49 = vld [vmem:[%s3672_s5 + $0x48] sm:$0xff] }
 0x53f   :  { %v1220_v55 = vadd.f32 %v2925_v46, %v1219_v43  ;;  %v1729_v46 = vld [vmem:[%s3672_s5 + $0x40] sm:$0xff]  ;;  %v1731_v43 = vld [vmem:[%s3672_s5 + $0x50] sm:$0xff] }
 0x540   :  { %v2816_v50 = vpack.c.bf16 %v1730_v49, %v1729_v46 }
 0x541   :  { %1286 = vmatmul.mubr.f32.vlgmr.msra.gmra.mrb[10].mxu0 %v1220_v55  ;;  %2240 = vmatmul.mubr.f32.vlgmr.msra.gmra.mrb[18].mxu1 %v1220_v55 }
 0x542   :  { %2694 = vmatpush1.bf16.msra.mxu0 %v3038_v15  ;;  %2725 = vmatpush3.bf16.msra.mxu1 %v3114_v40 }
 0x543   :  { %2696 = vmatprep.subr.bf16.mxu0 %v3041_v16  ;;  %2726 = vmatprep.subr.bf16.mxu1 %v2959_v48 }
 0x544   :  { %1450 = vmatprep.mubr.f32.mxu0 %v2958_v3  ;;  %2274 = vmatprep.mubr.msk.f32.mxu1 %vm2960_vm1, %v2958_v3 }
 0x546   :  { %2698 = vmatpush1.bf16.msra.mxu0 %v3061_v22  ;;  %2728 = vmatpush3.bf16.msra.mxu1 %v3148_v51 }
 0x547   :  { %2700 = vmatprep.subr.bf16.mxu0 %v3064_v23  ;;  %2729 = vmatprep.subr.bf16.mxu1 %v2959_v48 }
 0x54a   :  { %2702 = vmatpush1.bf16.msra.mxu0 %v3090_v31  ;;  %2731 = vmatpush3.bf16.msra.mxu1 %v3182_v61 }
 0x54b   :  { %2704 = vmatprep.subr.bf16.mxu0 %v3093_v33  ;;  %2732 = vmatprep.subr.bf16.mxu1 %v2959_v48 }
 0x54e   :  { %2706 = vmatpush1.bf16.msra.mxu0 %v3121_v42  ;;  %2734 = vmatpush3.bf16.msra.mxu1 %v3216_v8 }
 0x54f   :  { %2708 = vmatprep.subr.bf16.mxu0 %v3130_v45  ;;  %2735 = vmatprep.subr.bf16.mxu1 %v2959_v48 }
 0x552   :  { %2710 = vmatpush1.bf16.msra.mxu0 %v3155_v53  ;;  %2737 = vmatpush3.bf16.msra.mxu1 %v3244_v19 }
 0x553   :  { %2712 = vmatprep.subr.bf16.mxu0 %v3164_v56  ;;  %2738 = vmatprep.subr.bf16.mxu1 %v2959_v48 }
 0x556   :  { %2714 = vmatpush1.bf16.msra.mxu0 %v3189_v63  ;;  %2740 = vmatpush3.bf16.msra.mxu1 %v3264_v26 }
 0x557   :  { %2716 = vmatprep.subr.bf16.mxu0 %v3198_v2  ;;  %2741 = vmatprep.subr.bf16.mxu1 %v2959_v48 }
 0x55a   :  { %2718 = vmatpush1.bf16.msra.mxu0 %v3223_v10  ;;  %2743 = vmatpush3.bf16.msra.mxu1 %v3280_v29 }
 0x55b   :  { %2720 = vmatprep.subr.bf16.mxu0 %v3232_v14  ;;  %2744 = vmatprep.subr.bf16.mxu1 %v2959_v48 }
 0x55e   :  { %2722 = vmatpush1.bf16.msra.mxu0 %v3251_v21  ;;  %2746 = vmatpush3.bf16.msra.mxu1 %v3295_v34 }
 0x55f   :  { %2748 = vmatprep.subr.bf16.mxu0 %v3030_v12  ;;  %2779 = vmatprep.subr.bf16.mxu1 %v2959_v48 }
 0x614   :  { %v1287_v1 = vpop.f32.mrb[10].mxu0  ;;  %v1358_v57 = vpop.f32.mrb[18].mxu1 }
 0x615   :  { %v2848_v58 = vadd.f32 %v3347_v62, %v1287_v1  ;;  %v1289_v60 = vpop.f32.mrb[11].mxu0  ;;  %v2241_v0 = vpop.f32.mrb[19].mxu1  ;;  %v1359_v12 = vadd.f32 %v1358_v57, %v3359_v36  ;;  %v1733_v57 = vld [vmem:[%s3672_s5 + $0x60] sm:$0xff] }
 0x616   :  { %v2850_v5 = vadd.f32 %v3356_v24, %v1289_v60  ;;  %v1735_v0 = vld [vmem:[%s3672_s5 + $0x70] sm:$0xff] }
 0x617   :  { %v1846_v4 = vmul.f32 -1.442695, %v2848_v58  ;;  %v1734_v58 = vld [vmem:[%s3672_s5 + $0x68] sm:$0xff] }
 0x618   :  { %v1847_v37 = vmul.f32 -1.442695, %v2850_v5  ;;  %v2822_v60 = vpack.c.bf16 %v1734_v58, %v1733_v57 }
 0x619   :  { %2928 = vpow2.f32 %v1846_v4  ;;  %v1736_v4 = vld [vmem:[%s3672_s5 + $0x78] sm:$0xff] }
 0x61a   :  { %2930 = vpow2.f32 %v1847_v37  ;;  %v2825_v5 = vpack.c.bf16 %v1736_v4, %v1735_v0  ;;  %v12_v37 = vstv %s3673_s6 }
 0x61b   :  { %13 = vst [vmem:[#allocation4] sm:$0x1] %v12_v37 }
 0x623   :  { %v2929_v39 = vpop.eup %2928 }
 0x624   :  { %v1370_v44 = vadd.f32 1.0, %v2929_v39  ;;  %v2931_v54 = vpop.eup %2930 }
 0x625   :  { %v1377_v11 = vadd.f32 1.0, %v2931_v54 }
 0x626   :  { %2932 = vrcp.f32 %v1370_v44 }
 0x630   :  { %v2933_v47 = vpop.eup %2932 }
 0x631   :  { %v1380_v7 = vmul.f32 %v2933_v47, %v1359_v12 }
 0x633   :  { %v1381_v9 = vadd.f32 %v1380_v7, %v3345_v59 }
 0x635   :  { %2934 = vtanh.f32 %v1381_v9 }
 0x636   :  { %2936 = vrcp.f32 %v1377_v11 }
 0x63f   :  { %v2935_v13 = vpop.eup %2934 }
 0x640   :  { %v1383_v17 = vsub.f32 %v1220_v55, %v2935_v13  ;;  %v2937_v20 = vpop.eup %2936  ;;  %v1732_v55 = vld [vmem:[%s3672_s5 + $0x58] sm:$0xff] }
 0x641   :  { %v2819_v1 = vpack.c.bf16 %v1732_v55, %v1731_v43 }
 0x642   :  { %v1384_v25 = vmul.f32 %v2937_v20, %v1383_v17 }
 0x644   :  { %v1385_v27 = vadd.f32 %v2935_v13, %v1384_v25 }
 0x646   :  { %1451 = vmatmul.mubr.f32.vlgmr.msra.gmra.mrb[12].mxu0 %v1385_v27  ;;  %2275 = vmatmul.mubr.f32.vlgmr.msra.gmra.mrb[20].mxu1 %v1385_v27 }
 0x647   :  { %2750 = vmatpush1.bf16.msra.mxu0 %v3038_v15  ;;  %2781 = vmatpush3.bf16.msra.mxu1 %v3114_v40 }
 0x648   :  { %2752 = vmatprep.subr.bf16.mxu0 %v3041_v16  ;;  %2782 = vmatprep.subr.bf16.mxu1 %v2959_v48 }
 0x649   :  { %1615 = vmatprep.mubr.f32.mxu0 %v2958_v3  ;;  %2309 = vmatprep.mubr.msk.f32.mxu1 %vm2960_vm1, %v2958_v3 }
 0x64b   :  { %2754 = vmatpush1.bf16.msra.mxu0 %v3061_v22  ;;  %2784 = vmatpush3.bf16.msra.mxu1 %v3148_v51 }
 0x64c   :  { %2756 = vmatprep.subr.bf16.mxu0 %v3064_v23  ;;  %2785 = vmatprep.subr.bf16.mxu1 %v2959_v48 }
 0x64f   :  { %2758 = vmatpush1.bf16.msra.mxu0 %v3090_v31  ;;  %2787 = vmatpush3.bf16.msra.mxu1 %v3182_v61 }
 0x650   :  { %2760 = vmatprep.subr.bf16.mxu0 %v3093_v33  ;;  %2788 = vmatprep.subr.bf16.mxu1 %v2959_v48 }
 0x653   :  { %2762 = vmatpush1.bf16.msra.mxu0 %v3121_v42  ;;  %2790 = vmatpush3.bf16.msra.mxu1 %v3216_v8 }
 0x654   :  { %2764 = vmatprep.subr.bf16.mxu0 %v3130_v45  ;;  %2791 = vmatprep.subr.bf16.mxu1 %v2959_v48 }
 0x657   :  { %2766 = vmatpush1.bf16.msra.mxu0 %v3155_v53  ;;  %2793 = vmatpush3.bf16.msra.mxu1 %v3244_v19 }
 0x658   :  { %2768 = vmatprep.subr.bf16.mxu0 %v3164_v56  ;;  %2794 = vmatprep.subr.bf16.mxu1 %v2959_v48 }
 0x65b   :  { %2770 = vmatpush1.bf16.msra.mxu0 %v3189_v63  ;;  %2796 = vmatpush3.bf16.msra.mxu1 %v3264_v26 }
 0x65c   :  { %2772 = vmatprep.subr.bf16.mxu0 %v3198_v2  ;;  %2797 = vmatprep.subr.bf16.mxu1 %v2959_v48 }
 0x65f   :  { %2774 = vmatpush1.bf16.msra.mxu0 %v3223_v10  ;;  %2799 = vmatpush3.bf16.msra.mxu1 %v3280_v29  ;;  %v1721_v29 = vld [vmem:[%s3672_s5] sm:$0xff] }
 0x660   :  { %2776 = vmatprep.subr.bf16.mxu0 %v3232_v14  ;;  %2800 = vmatprep.subr.bf16.mxu1 %v2959_v48 }
 0x663   :  { %2778 = vmatpush1.bf16.msra.mxu0 %v3251_v21  ;;  %2802 = vmatpush3.bf16.msra.mxu1 %v3295_v34  ;;  %v1722_v34 = vld [vmem:[%s3672_s5 + $0x8] sm:$0xff] }
 0x664   :  { %2803 = vmatprep.subr.bf16.mxu0 %v2959_v48  ;;  %v2804_v59 = vpack.c.bf16 %v1722_v34, %v1721_v29 }
 0x719   :  { %v1452_v15 = vpop.f32.mrb[12].mxu0  ;;  %v1523_v16 = vpop.f32.mrb[20].mxu1 }
 0x71a   :  { %v2852_v22 = vadd.f32 %v3347_v62, %v1452_v15  ;;  %v1454_v23 = vpop.f32.mrb[13].mxu0  ;;  %v2276_v31 = vpop.f32.mrb[21].mxu1  ;;  %v1524_v56 = vadd.f32 %v1523_v16, %v3359_v36 }
 0x71b   :  { %v2854_v40 = vadd.f32 %v3356_v24, %v1454_v23 }
 0x71c   :  { %v1848_v33 = vmul.f32 -1.442695, %v2852_v22 }
 0x71d   :  { %v1849_v42 = vmul.f32 -1.442695, %v2854_v40 }
 0x71e   :  { %2938 = vpow2.f32 %v1848_v33  ;;  %v1852_v33 = vld [vmem:[#allocation4] ss:$0 sm:$0xff] }
 0x71f   :  { %2940 = vpow2.f32 %v1849_v42 }
 0x728   :  { %v2939_v45 = vpop.eup %2938 }
 0x729   :  { %v1535_v51 = vadd.f32 1.0, %v2939_v45  ;;  %v2941_v53 = vpop.eup %2940 }
 0x72a   :  { %v1542_v8 = vadd.f32 1.0, %v2941_v53 }
 0x72b   :  { %2942 = vrcp.f32 %v1535_v51 }
 0x735   :  { %v2943_v61 = vpop.eup %2942 }
 0x736   :  { %v1545_v63 = vmul.f32 %v2943_v61, %v1524_v56 }
 0x738   :  { %v1546_v2 = vadd.f32 %v1545_v63, %v3354_v18  ;;  %v1723_v18 = vld [vmem:[%s3672_s5 + $0x10] sm:$0xff] }
 0x73a   :  { %2944 = vtanh.f32 %v1546_v2 }
 0x73b   :  { %2946 = vrcp.f32 %v1542_v8 }
 0x744   :  { %v2945_v10 = vpop.eup %2944 }
 0x745   :  { %v1548_v14 = vsub.f32 %v1385_v27, %v2945_v10  ;;  %v2947_v19 = vpop.eup %2946 }
 0x747   :  { %v1549_v21 = vmul.f32 %v2947_v19, %v1548_v14 }
 0x749   :  { %v3595_v26 = vadd.f32 %v2945_v10, %v1549_v21 }
 0x74b   :  { %1616 = vmatmul.mubr.f32.vlgmr.msra.gmra.mrb[14].mxu0 %v3595_v26  ;;  %2310 = vmatmul.mubr.f32.vlgmr.msra.gmra.mrb[22].mxu1 %v3595_v26 }
 0x74c   :  { %2344 = vmatprep.mubr.msk.f32.mxu0 %vm2960_vm1, %v2958_v3  ;;  %2805 = vmatpush3.bf16.msra.mxu0 %v2804_v59  ;;  %v1724_v3 = vld [vmem:[%s3672_s5 + $0x18] sm:$0xff] }
 0x74d   :  { %2806 = vmatprep.subr.bf16.mxu0 %v2959_v48  ;;  %v2807_v28 = vpack.c.bf16 %v1724_v3, %v1723_v18 }
 0x750   :  { %2808 = vmatpush3.bf16.msra.mxu0 %v2807_v28 }
 0x751   :  { %2809 = vmatprep.subr.bf16.mxu0 %v2959_v48 }
 0x754   :  { %2811 = vmatpush3.bf16.msra.mxu0 %v2810_v32 }
 0x755   :  { %2812 = vmatprep.subr.bf16.mxu0 %v2959_v48 }
 0x758   :  { %2814 = vmatpush3.bf16.msra.mxu0 %v2813_v41 }
 0x759   :  { %2815 = vmatprep.subr.bf16.mxu0 %v2959_v48 }
 0x75c   :  { %2817 = vmatpush3.bf16.msra.mxu0 %v2816_v50 }
 0x75d   :  { %2818 = vmatprep.subr.bf16.mxu0 %v2959_v48 }
 0x760   :  { %2820 = vmatpush3.bf16.msra.mxu0 %v2819_v1 }
 0x761   :  { %2821 = vmatprep.subr.bf16.mxu0 %v2959_v48 }
 0x764   :  { %2823 = vmatpush3.bf16.msra.mxu0 %v2822_v60 }
 0x765   :  { %2824 = vmatprep.subr.bf16.mxu0 %v2959_v48 }
 0x768   :  { %2826 = vmatpush3.bf16.msra.mxu0 %v2825_v5 }
 0x81e   :  { %v1617_v39 = vpop.f32.mrb[14].mxu0  ;;  %v1688_v44 = vpop.f32.mrb[22].mxu1 }
 0x81f   :  { %v2856_v54 = vadd.f32 %v3347_v62, %v1617_v39  ;;  %v1619_v12 = vpop.f32.mrb[15].mxu0  ;;  %v2311_v47 = vpop.f32.mrb[23].mxu1  ;;  %v1689_v20 = vadd.f32 %v1688_v44, %v3359_v36 }
 0x820   :  { %v2858_v9 = vadd.f32 %v3356_v24, %v1619_v12 }
 0x821   :  { %v1850_v7 = vmul.f32 -1.442695, %v2856_v54 }
 0x822   :  { %v1851_v11 = vmul.f32 -1.442695, %v2858_v9 }
 0x823   :  { %2948 = vpow2.f32 %v1850_v7 }
 0x824   :  { %2950 = vpow2.f32 %v1851_v11 }
 0x82d   :  { %v2949_v13 = vpop.eup %2948 }
 0x82e   :  { %v1700_v17 = vadd.f32 1.0, %v2949_v13  ;;  %v2951_v48 = vpop.eup %2950 }
 0x82f   :  { %v1707_v16 = vadd.f32 1.0, %v2951_v48 }
 0x830   :  { %2952 = vrcp.f32 %v1700_v17 }
 0x83a   :  { %v2953_v25 = vpop.eup %2952 }
 0x83b   :  { %v1710_v27 = vmul.f32 %v2953_v25, %v1689_v20 }
 0x83d   :  { %v1711_v15 = vadd.f32 %v1710_v27, %v3351_v6 }
 0x83f   :  { %2954 = vtanh.f32 %v1711_v15 }
 0x840   :  { %2956 = vrcp.f32 %v1707_v16 }
 0x849   :  { %v2955_v62 = vpop.eup %2954 }
 0x84a   :  { %v1713_v22 = vsub.f32 %v3595_v26, %v2955_v62  ;;  %v2957_v23 = vpop.eup %2956 }
 0x84c   :  { %v1714_v24 = vmul.f32 %v2957_v23, %v1713_v22 }
 0x84e   :  { %v1715_v31 = vadd.f32 %v2955_v62, %v1714_v24 }
 0x850   :  { %2345 = vmatmul.mubr.f32.vlgmr.msra.gmra.mrb[16].mxu0 %v1715_v31 }
 0x923   :  { %v1810_v40 = vpop.f32.mrb[16].mxu0 }
 0x924   :  { %v1811_v42 = vadd.f32 %v1852_v33, %v1810_v40  ;;  %v2346_v45 = vpop.f32.mrb[17].mxu0 }
 0x926   :  { %1815 = vst.msk [vmem:[%s3674_s7] sm:$0xff] %vm1814_vm2, %v1811_v42 }

</bundles_post_ra>
